<compile_context>
chip_gen: v6e
topology: v6e:2x2x1
jax: 0.10.0
libtpu: 0.0.40
codegen_flags: <defaults>
</compile_context>

<pallas_src>
import jax
import jax.numpy as jnp
from jax import lax
from jax.experimental import pallas as pl
from jax.experimental.pallas import tpu as pltpu


def _causal_taps(x, taps=5):
    """[Ci, T] -> [taps*Ci, T] im2col stack for a causal (left-padded) conv.

    Row block k (k = 0..taps-1) holds  stack[k*Ci + ci, t] == x_pad[ci, t + k]
    where x_pad is x left-zero-padded by (taps-1) along time.
    """
    ci, t = x.shape
    xp = jnp.concatenate([jnp.zeros((ci, taps - 1), x.dtype), x], axis=1)
    return jnp.concatenate([xp[:, k:k + t] for k in range(taps)], axis=0)


def _postconvnet_kernel(x_ref, w1_ref, wm_ref, w2_ref, scale_ref, shift_ref,
                        b2_ref, o_ref):
    # Per grid step (one batch element), channels on sublanes / time on lanes:
    #   x_ref     : (1, Cin, T)
    #   w1_ref    : (H, 5*Cin)    conv1 weight  [co, k*Cin + ci]  (compute dtype)
    #   wm_ref    : (3, H, 5*H)   middle conv weights
    #   w2_ref    : (Cin, 5*H)    conv2 weight
    #   scale_ref : (4, H, 1) f32 folded BN scale (gamma * rsqrt(var + eps))
    #   shift_ref : (4, H, 1) f32 folded BN shift (beta + (bias - mean) * scale)
    #   b2_ref    : (Cin, 1)  f32 conv2 bias
    #   o_ref     : (1, Cin, T)
    cdtype = w1_ref.dtype

    def causal_conv(h, w):
        # Single MXU matmul per layer: [Co, 5*Ci] @ [5*Ci, T] -> [Co, T] f32.
        xk = _causal_taps(h, 5).astype(cdtype)
        return jnp.dot(w, xk, preferred_element_type=jnp.float32)

    x = x_ref[0, :, :].astype(jnp.float32)                       # (Cin, T)

    # conv1 -> pre_batchnorm -> tanh          (dropout = identity, eval mode)
    h = jnp.tanh(causal_conv(x, w1_ref[...]) * scale_ref[0] + shift_ref[0])

    # 3 x (conv -> batchnorm -> tanh)         (dropout = identity, eval mode)
    for l in range(3):
        h = jnp.tanh(causal_conv(h, wm_ref[l]) * scale_ref[l + 1]
                     + shift_ref[l + 1])

    # conv2 (bias only, no BN / tanh)
    y = causal_conv(h, w2_ref[...]) + b2_ref[...]
    o_ref[0, :, :] = y.astype(o_ref.dtype)


def postconvnet_forward(x, w1, b1, wmid, bmid, gamma, beta, mean, var, w2, b2,
                        *, eps: float = 1e-5, compute_dtype=jnp.bfloat16):
    """PostConvNet forward (eval mode).  Parameters use PyTorch layouts.

    x     : [B, Cin, T]             (Cin = input_dims * outputs_per_step)
    w1    : [H, Cin, 5],   b1   : [H]            (torch Conv1d (out, in, k))
    wmid  : [3, H, H, 5],  bmid : [3, H]
    w2    : [Cin, H, 5],   b2   : [Cin]
    gamma/beta/mean/var : [4, H]  (row 0 = pre_batchnorm, rows 1..3 = batch_norm_list)
    returns [B, Cin, T]
    """
    B, Cin, T = x.shape
    H = w1.shape[0]
    assert w1.shape == (H, Cin, 5), w1.shape
    assert wmid.shape == (3, H, H, 5), wmid.shape
    assert w2.shape == (Cin, H, 5), w2.shape

    def to_matmul(w):
        # (Co, Ci, 5) -> (Co, 5*Ci) with [co, k*Ci + ci] = w[co, ci, k]
        co, ci, k = w.shape
        return jnp.transpose(w, (0, 2, 1)).reshape(co, k * ci).astype(compute_dtype)

    w1m = to_matmul(w1)                                       # (H, 5*Cin)
    wmm = jnp.stack([to_matmul(wmid[l]) for l in range(3)])   # (3, H, 5*H)
    w2m = to_matmul(w2)                                       # (Cin, 5*H)

    # Fold eval-mode BatchNorm (running stats) + first-4-layer conv biases.
    inv = (gamma / jnp.sqrt(var + eps)).astype(jnp.float32)              # (4, H)
    bias4 = jnp.concatenate([b1[None, :], bmid], axis=0).astype(jnp.float32)
    scale = inv[..., None]                                               # (4, H, 1)
    shift = (beta.astype(jnp.float32) + (bias4 - mean) * inv)[..., None]  # (4, H, 1)
    b2c = b2.astype(jnp.float32)[:, None]                                # (Cin, 1)

    itemsize = jnp.dtype(compute_dtype).itemsize
    flops = 2 * B * T * (5 * Cin * H + 3 * 5 * H * H + 5 * H * Cin)
    bytes_accessed = (2 * x.size * x.dtype.itemsize
                      + (w1m.size + wmm.size + w2m.size) * itemsize
                      + (scale.size + shift.size + b2c.size) * 4)
    cost = pl.CostEstimate(flops=int(flops),
                           transcendentals=int(4 * B * T * H),
                           bytes_accessed=int(bytes_accessed))

    return pl.pallas_call(
        _postconvnet_kernel,
        out_shape=jax.ShapeDtypeStruct((B, Cin, T), x.dtype),
        grid_spec=pltpu.PrefetchScalarGridSpec(
            num_scalar_prefetch=0,
            grid=(B,),
            in_specs=[
                pl.BlockSpec((1, Cin, T),    lambda b: (b, 0, 0)),     # x
                pl.BlockSpec((H, 5 * Cin),   lambda b: (0, 0)),        # w1m
                pl.BlockSpec((3, H, 5 * H),  lambda b: (0, 0, 0)),     # wmm
                pl.BlockSpec((Cin, 5 * H),   lambda b: (0, 0)),        # w2m
                pl.BlockSpec((4, H, 1),      lambda b: (0, 0, 0)),     # scale
                pl.BlockSpec((4, H, 1),      lambda b: (0, 0, 0)),     # shift
                pl.BlockSpec((Cin, 1),       lambda b: (0, 0)),        # b2
            ],
            out_specs=pl.BlockSpec((1, Cin, T), lambda b: (b, 0, 0)),
        ),
        compiler_params=pltpu.CompilerParams(
            dimension_semantics=("parallel",)),
        cost_estimate=cost,
    )(x, w1m, wmm, w2m, scale, shift, b2c)


def _ref_forward(x, w1, b1, wmid, bmid, gamma, beta, mean, var, w2, b2,
                 *, eps: float = 1e-5, quantize_dtype=None):
    """Plain-XLA reference with the PyTorch module's eval-mode semantics.

    If `quantize_dtype` is set, weights and per-layer conv inputs are rounded
    through that dtype (matching the kernel's mixed precision); accumulation,
    BatchNorm and tanh stay in float32, exactly as in the kernel.
    """
    def q(a):
        a = a.astype(jnp.float32)
        if quantize_dtype is not None:
            a = a.astype(quantize_dtype).astype(jnp.float32)
        return a

    def cconv(h, w, b):  # h: [B,Ci,T], w: [Co,Ci,5], b: [Co]
        y = lax.conv_general_dilated(
            q(h), q(w), window_strides=(1,), padding=[(4, 0)],
            dimension_numbers=('NCW', 'OIW', 'NCW'),
            precision=lax.Precision.HIGHEST,
            preferred_element_type=jnp.float32)
        return y + b.astype(jnp.float32)[None, :, None]

    def bn(h, l):
        inv = gamma[l] / jnp.sqrt(var[l] + eps)
        return (h - mean[l][None, :, None]) * inv[None, :, None] \
            + beta[l][None, :, None]

    h = jnp.tanh(bn(cconv(x, w1, b1), 0))
    for l in range(3):
        h = jnp.tanh(bn(cconv(h, wmid[l], bmid[l]), l + 1))
    return cconv(h, w2, b2)


if __name__ == "__main__":
    # batch=2, input_dims=4, outputs_per_step=2 (Cin=8), num_hidden=32, T=128
    # (T chosen as a lane-width multiple so the kernel's stores are lane-dense).
    B, input_dims, outputs_per_step, H, T = 2, 4, 2, 32, 128
    Cin = input_dims * outputs_per_step

    key = jax.random.PRNGKey(0)
    ks = jax.random.split(key, 11)
    x     = jax.random.normal(ks[0], (B, Cin, T), jnp.float32)
    w1    = jax.random.normal(ks[1], (H, Cin, 5), jnp.float32) * 0.1
    b1    = jax.random.normal(ks[2], (H,), jnp.float32) * 0.1
    wmid  = jax.random.normal(ks[3], (3, H, H, 5), jnp.float32) * 0.1
    bmid  = jax.random.normal(ks[4], (3, H), jnp.float32) * 0.1
    w2    = jax.random.normal(ks[5], (Cin, H, 5), jnp.float32) * 0.1
    b2    = jax.random.normal(ks[6], (Cin,), jnp.float32) * 0.1
    gamma = 1.0 + 0.1 * jax.random.normal(ks[7], (4, H), jnp.float32)
    beta  = 0.1 * jax.random.normal(ks[8], (4, H), jnp.float32)
    mean  = 0.1 * jax.random.normal(ks[9], (4, H), jnp.float32)
    var   = 1.0 + 0.1 * jnp.abs(jax.random.normal(ks[10], (4, H), jnp.float32))

    args = (x, w1, b1, wmid, bmid, gamma, beta, mean, var, w2, b2)

    out = jax.block_until_ready(postconvnet_forward(*args))
    assert out.shape == (B, Cin, T), out.shape

    # Strict check vs an XLA reference using the same mixed precision
    # (bf16 weights / conv inputs, f32 accumulation and f32 BN+tanh epilogue).
    ref_q = jax.block_until_ready(
        _ref_forward(*args, quantize_dtype=jnp.bfloat16))
    assert jnp.allclose(out, ref_q, atol=2e-3, rtol=2e-3), (
        float(jnp.max(jnp.abs(out - ref_q))))

    # Loose sanity check vs the full-float32 module semantics (bounds the
    # bf16 quantization error; catches any gross semantic mismatch).
    ref_f32 = jax.block_until_ready(_ref_forward(*args))
    assert jnp.allclose(out, ref_f32, atol=0.2, rtol=0.2), (
        float(jnp.max(jnp.abs(out - ref_f32))))

    print("KERNEL_OK")
</pallas_src>

<mosaic_0001>
module attributes {stable_mosaic.version = 11 : i64} {
  func.func @_postconvnet_kernel(%arg0: i32, %arg1: memref<1x8x128xf32, #tpu.memory_space<vmem>>, %arg2: memref<32x40xbf16, #tpu.memory_space<vmem>>, %arg3: memref<3x32x160xbf16, #tpu.memory_space<vmem>>, %arg4: memref<8x160xbf16, #tpu.memory_space<vmem>>, %arg5: memref<4x32x1xf32, #tpu.memory_space<vmem>>, %arg6: memref<4x32x1xf32, #tpu.memory_space<vmem>>, %arg7: memref<8x1xf32, #tpu.memory_space<vmem>>, %arg8: memref<1x8x128xf32, #tpu.memory_space<vmem>>) attributes {dimension_semantics = [#tpu.dimension_semantics<parallel>], iteration_bounds = array<i64: 2>, scalar_prefetch = 0 : i64, scratch_operands = 0 : i64, tpu.core_type = #tpu.core_type<tc>, window_params = [{transform_indices = @transform_0, window_bounds = array<i64: 1, 8, 128>}, {pipeline_mode = #tpu.pipeline_mode<synchronous>, transform_indices = @transform_1, window_bounds = array<i64: 32, 40>}, {pipeline_mode = #tpu.pipeline_mode<synchronous>, transform_indices = @transform_2, window_bounds = array<i64: 3, 32, 160>}, {pipeline_mode = #tpu.pipeline_mode<synchronous>, transform_indices = @transform_3, window_bounds = array<i64: 8, 160>}, {pipeline_mode = #tpu.pipeline_mode<synchronous>, transform_indices = @transform_4, window_bounds = array<i64: 4, 32, 1>}, {pipeline_mode = #tpu.pipeline_mode<synchronous>, transform_indices = @transform_5, window_bounds = array<i64: 4, 32, 1>}, {pipeline_mode = #tpu.pipeline_mode<synchronous>, transform_indices = @transform_6, window_bounds = array<i64: 8, 1>}, {transform_indices = @transform_7, window_bounds = array<i64: 1, 8, 128>}]} {
    %c0 = arith.constant 0 : index
    %c0_0 = arith.constant 0 : index
    %c0_1 = arith.constant 0 : index
    %0 = vector.load %arg1[%c0, %c0_0, %c0_1] : memref<1x8x128xf32, #tpu.memory_space<vmem>>, vector<1x8x128xf32>
    %1 = vector.shape_cast %0 : vector<1x8x128xf32> to vector<8x128xf32>
    %c0_2 = arith.constant 0 : index
    %c0_3 = arith.constant 0 : index
    %2 = vector.load %arg2[%c0_2, %c0_3] : memref<32x40xbf16, #tpu.memory_space<vmem>>, vector<32x40xbf16>
    %cst = arith.constant 0.000000e+00 : f32
    %3 = vector.broadcast %cst : f32 to vector<8x4xf32>
    %4 = tpu.concatenate %3, %1 in 1 : vector<8x4xf32>, vector<8x128xf32> -> vector<8x132xf32>
    %5 = vector.extract_strided_slice %4 {offsets = [0, 0], sizes = [8, 128], strides = [1, 1]} : vector<8x132xf32> to vector<8x128xf32>
    %6 = vector.extract_strided_slice %4 {offsets = [0, 1], sizes = [8, 128], strides = [1, 1]} : vector<8x132xf32> to vector<8x128xf32>
    %7 = vector.extract_strided_slice %4 {offsets = [0, 2], sizes = [8, 128], strides = [1, 1]} : vector<8x132xf32> to vector<8x128xf32>
    %8 = vector.extract_strided_slice %4 {offsets = [0, 3], sizes = [8, 128], strides = [1, 1]} : vector<8x132xf32> to vector<8x128xf32>
    %9 = vector.extract_strided_slice %4 {offsets = [0, 4], sizes = [8, 128], strides = [1, 1]} : vector<8x132xf32> to vector<8x128xf32>
    %10 = tpu.concatenate %5, %6, %7, %8, %9 in 0 : vector<8x128xf32>, vector<8x128xf32>, vector<8x128xf32>, vector<8x128xf32>, vector<8x128xf32> -> vector<40x128xf32>
    %11 = arith.truncf %10 : vector<40x128xf32> to vector<40x128xbf16>
    %cst_4 = arith.constant dense<0.000000e+00> : vector<32x128xf32>
    %12 = tpu.matmul %2, %11, %cst_4 {dimension_numbers = #tpu.dot_dimension_numbers<[1], [0], [0], [1], [0, 0, 1, 1], [], []>} : vector<32x40xbf16>, vector<40x128xbf16>, vector<32x128xf32> -> vector<32x128xf32>
    %c0_5 = arith.constant 0 : index
    %c0_6 = arith.constant 0 : index
    %c0_7 = arith.constant 0 : index
    %13 = vector.load %arg5[%c0_5, %c0_6, %c0_7] : memref<4x32x1xf32, #tpu.memory_space<vmem>>, vector<1x32x1xf32>
    %14 = vector.shape_cast %13 : vector<1x32x1xf32> to vector<32x1xf32>
    %15 = vector.broadcast %14 : vector<32x1xf32> to vector<32x128xf32>
    %16 = arith.mulf %12, %15 : vector<32x128xf32>
    %c0_8 = arith.constant 0 : index
    %c0_9 = arith.constant 0 : index
    %c0_10 = arith.constant 0 : index
    %17 = vector.load %arg6[%c0_8, %c0_9, %c0_10] : memref<4x32x1xf32, #tpu.memory_space<vmem>>, vector<1x32x1xf32>
    %18 = vector.shape_cast %17 : vector<1x32x1xf32> to vector<32x1xf32>
    %19 = vector.broadcast %18 : vector<32x1xf32> to vector<32x128xf32>
    %20 = arith.addf %16, %19 : vector<32x128xf32>
    %21 = math.tanh %20 : vector<32x128xf32>
    %c0_11 = arith.constant 0 : index
    %c0_12 = arith.constant 0 : index
    %c0_13 = arith.constant 0 : index
    %22 = vector.load %arg3[%c0_11, %c0_12, %c0_13] : memref<3x32x160xbf16, #tpu.memory_space<vmem>>, vector<1x32x160xbf16>
    %23 = vector.shape_cast %22 : vector<1x32x160xbf16> to vector<32x160xbf16>
    %cst_14 = arith.constant 0.000000e+00 : f32
    %24 = vector.broadcast %cst_14 : f32 to vector<32x4xf32>
    %25 = tpu.concatenate %24, %21 in 1 : vector<32x4xf32>, vector<32x128xf32> -> vector<32x132xf32>
    %26 = vector.extract_strided_slice %25 {offsets = [0, 0], sizes = [32, 128], strides = [1, 1]} : vector<32x132xf32> to vector<32x128xf32>
    %27 = vector.extract_strided_slice %25 {offsets = [0, 1], sizes = [32, 128], strides = [1, 1]} : vector<32x132xf32> to vector<32x128xf32>
    %28 = vector.extract_strided_slice %25 {offsets = [0, 2], sizes = [32, 128], strides = [1, 1]} : vector<32x132xf32> to vector<32x128xf32>
    %29 = vector.extract_strided_slice %25 {offsets = [0, 3], sizes = [32, 128], strides = [1, 1]} : vector<32x132xf32> to vector<32x128xf32>
    %30 = vector.extract_strided_slice %25 {offsets = [0, 4], sizes = [32, 128], strides = [1, 1]} : vector<32x132xf32> to vector<32x128xf32>
    %31 = tpu.concatenate %26, %27, %28, %29, %30 in 0 : vector<32x128xf32>, vector<32x128xf32>, vector<32x128xf32>, vector<32x128xf32>, vector<32x128xf32> -> vector<160x128xf32>
    %32 = arith.truncf %31 : vector<160x128xf32> to vector<160x128xbf16>
    %cst_15 = arith.constant dense<0.000000e+00> : vector<32x128xf32>
    %33 = tpu.matmul %23, %32, %cst_15 {dimension_numbers = #tpu.dot_dimension_numbers<[1], [0], [0], [1], [0, 0, 1, 1], [], []>} : vector<32x160xbf16>, vector<160x128xbf16>, vector<32x128xf32> -> vector<32x128xf32>
    %c1 = arith.constant 1 : index
    %c0_16 = arith.constant 0 : index
    %c0_17 = arith.constant 0 : index
    %34 = vector.load %arg5[%c1, %c0_16, %c0_17] : memref<4x32x1xf32, #tpu.memory_space<vmem>>, vector<1x32x1xf32>
    %35 = vector.shape_cast %34 : vector<1x32x1xf32> to vector<32x1xf32>
    %36 = vector.broadcast %35 : vector<32x1xf32> to vector<32x128xf32>
    %37 = arith.mulf %33, %36 : vector<32x128xf32>
    %c1_18 = arith.constant 1 : index
    %c0_19 = arith.constant 0 : index
    %c0_20 = arith.constant 0 : index
    %38 = vector.load %arg6[%c1_18, %c0_19, %c0_20] : memref<4x32x1xf32, #tpu.memory_space<vmem>>, vector<1x32x1xf32>
    %39 = vector.shape_cast %38 : vector<1x32x1xf32> to vector<32x1xf32>
    %40 = vector.broadcast %39 : vector<32x1xf32> to vector<32x128xf32>
    %41 = arith.addf %37, %40 : vector<32x128xf32>
    %42 = math.tanh %41 : vector<32x128xf32>
    %c1_21 = arith.constant 1 : index
    %c0_22 = arith.constant 0 : index
    %c0_23 = arith.constant 0 : index
    %43 = vector.load %arg3[%c1_21, %c0_22, %c0_23] : memref<3x32x160xbf16, #tpu.memory_space<vmem>>, vector<1x32x160xbf16>
    %44 = vector.shape_cast %43 : vector<1x32x160xbf16> to vector<32x160xbf16>
    %cst_24 = arith.constant 0.000000e+00 : f32
    %45 = vector.broadcast %cst_24 : f32 to vector<32x4xf32>
    %46 = tpu.concatenate %45, %42 in 1 : vector<32x4xf32>, vector<32x128xf32> -> vector<32x132xf32>
    %47 = vector.extract_strided_slice %46 {offsets = [0, 0], sizes = [32, 128], strides = [1, 1]} : vector<32x132xf32> to vector<32x128xf32>
    %48 = vector.extract_strided_slice %46 {offsets = [0, 1], sizes = [32, 128], strides = [1, 1]} : vector<32x132xf32> to vector<32x128xf32>
    %49 = vector.extract_strided_slice %46 {offsets = [0, 2], sizes = [32, 128], strides = [1, 1]} : vector<32x132xf32> to vector<32x128xf32>
    %50 = vector.extract_strided_slice %46 {offsets = [0, 3], sizes = [32, 128], strides = [1, 1]} : vector<32x132xf32> to vector<32x128xf32>
    %51 = vector.extract_strided_slice %46 {offsets = [0, 4], sizes = [32, 128], strides = [1, 1]} : vector<32x132xf32> to vector<32x128xf32>
    %52 = tpu.concatenate %47, %48, %49, %50, %51 in 0 : vector<32x128xf32>, vector<32x128xf32>, vector<32x128xf32>, vector<32x128xf32>, vector<32x128xf32> -> vector<160x128xf32>
    %53 = arith.truncf %52 : vector<160x128xf32> to vector<160x128xbf16>
    %cst_25 = arith.constant dense<0.000000e+00> : vector<32x128xf32>
    %54 = tpu.matmul %44, %53, %cst_25 {dimension_numbers = #tpu.dot_dimension_numbers<[1], [0], [0], [1], [0, 0, 1, 1], [], []>} : vector<32x160xbf16>, vector<160x128xbf16>, vector<32x128xf32> -> vector<32x128xf32>
    %c2 = arith.constant 2 : index
    %c0_26 = arith.constant 0 : index
    %c0_27 = arith.constant 0 : index
    %55 = vector.load %arg5[%c2, %c0_26, %c0_27] : memref<4x32x1xf32, #tpu.memory_space<vmem>>, vector<1x32x1xf32>
    %56 = vector.shape_cast %55 : vector<1x32x1xf32> to vector<32x1xf32>
    %57 = vector.broadcast %56 : vector<32x1xf32> to vector<32x128xf32>
    %58 = arith.mulf %54, %57 : vector<32x128xf32>
    %c2_28 = arith.constant 2 : index
    %c0_29 = arith.constant 0 : index
    %c0_30 = arith.constant 0 : index
    %59 = vector.load %arg6[%c2_28, %c0_29, %c0_30] : memref<4x32x1xf32, #tpu.memory_space<vmem>>, vector<1x32x1xf32>
    %60 = vector.shape_cast %59 : vector<1x32x1xf32> to vector<32x1xf32>
    %61 = vector.broadcast %60 : vector<32x1xf32> to vector<32x128xf32>
    %62 = arith.addf %58, %61 : vector<32x128xf32>
    %63 = math.tanh %62 : vector<32x128xf32>
    %c2_31 = arith.constant 2 : index
    %c0_32 = arith.constant 0 : index
    %c0_33 = arith.constant 0 : index
    %64 = vector.load %arg3[%c2_31, %c0_32, %c0_33] : memref<3x32x160xbf16, #tpu.memory_space<vmem>>, vector<1x32x160xbf16>
    %65 = vector.shape_cast %64 : vector<1x32x160xbf16> to vector<32x160xbf16>
    %cst_34 = arith.constant 0.000000e+00 : f32
    %66 = vector.broadcast %cst_34 : f32 to vector<32x4xf32>
    %67 = tpu.concatenate %66, %63 in 1 : vector<32x4xf32>, vector<32x128xf32> -> vector<32x132xf32>
    %68 = vector.extract_strided_slice %67 {offsets = [0, 0], sizes = [32, 128], strides = [1, 1]} : vector<32x132xf32> to vector<32x128xf32>
    %69 = vector.extract_strided_slice %67 {offsets = [0, 1], sizes = [32, 128], strides = [1, 1]} : vector<32x132xf32> to vector<32x128xf32>
    %70 = vector.extract_strided_slice %67 {offsets = [0, 2], sizes = [32, 128], strides = [1, 1]} : vector<32x132xf32> to vector<32x128xf32>
    %71 = vector.extract_strided_slice %67 {offsets = [0, 3], sizes = [32, 128], strides = [1, 1]} : vector<32x132xf32> to vector<32x128xf32>
    %72 = vector.extract_strided_slice %67 {offsets = [0, 4], sizes = [32, 128], strides = [1, 1]} : vector<32x132xf32> to vector<32x128xf32>
    %73 = tpu.concatenate %68, %69, %70, %71, %72 in 0 : vector<32x128xf32>, vector<32x128xf32>, vector<32x128xf32>, vector<32x128xf32>, vector<32x128xf32> -> vector<160x128xf32>
    %74 = arith.truncf %73 : vector<160x128xf32> to vector<160x128xbf16>
    %cst_35 = arith.constant dense<0.000000e+00> : vector<32x128xf32>
    %75 = tpu.matmul %65, %74, %cst_35 {dimension_numbers = #tpu.dot_dimension_numbers<[1], [0], [0], [1], [0, 0, 1, 1], [], []>} : vector<32x160xbf16>, vector<160x128xbf16>, vector<32x128xf32> -> vector<32x128xf32>
    %c3 = arith.constant 3 : index
    %c0_36 = arith.constant 0 : index
    %c0_37 = arith.constant 0 : index
    %76 = vector.load %arg5[%c3, %c0_36, %c0_37] : memref<4x32x1xf32, #tpu.memory_space<vmem>>, vector<1x32x1xf32>
    %77 = vector.shape_cast %76 : vector<1x32x1xf32> to vector<32x1xf32>
    %78 = vector.broadcast %77 : vector<32x1xf32> to vector<32x128xf32>
    %79 = arith.mulf %75, %78 : vector<32x128xf32>
    %c3_38 = arith.constant 3 : index
    %c0_39 = arith.constant 0 : index
    %c0_40 = arith.constant 0 : index
    %80 = vector.load %arg6[%c3_38, %c0_39, %c0_40] : memref<4x32x1xf32, #tpu.memory_space<vmem>>, vector<1x32x1xf32>
    %81 = vector.shape_cast %80 : vector<1x32x1xf32> to vector<32x1xf32>
    %82 = vector.broadcast %81 : vector<32x1xf32> to vector<32x128xf32>
    %83 = arith.addf %79, %82 : vector<32x128xf32>
    %84 = math.tanh %83 : vector<32x128xf32>
    %c0_41 = arith.constant 0 : index
    %c0_42 = arith.constant 0 : index
    %85 = vector.load %arg4[%c0_41, %c0_42] : memref<8x160xbf16, #tpu.memory_space<vmem>>, vector<8x160xbf16>
    %cst_43 = arith.constant 0.000000e+00 : f32
    %86 = vector.broadcast %cst_43 : f32 to vector<32x4xf32>
    %87 = tpu.concatenate %86, %84 in 1 : vector<32x4xf32>, vector<32x128xf32> -> vector<32x132xf32>
    %88 = vector.extract_strided_slice %87 {offsets = [0, 0], sizes = [32, 128], strides = [1, 1]} : vector<32x132xf32> to vector<32x128xf32>
    %89 = vector.extract_strided_slice %87 {offsets = [0, 1], sizes = [32, 128], strides = [1, 1]} : vector<32x132xf32> to vector<32x128xf32>
    %90 = vector.extract_strided_slice %87 {offsets = [0, 2], sizes = [32, 128], strides = [1, 1]} : vector<32x132xf32> to vector<32x128xf32>
    %91 = vector.extract_strided_slice %87 {offsets = [0, 3], sizes = [32, 128], strides = [1, 1]} : vector<32x132xf32> to vector<32x128xf32>
    %92 = vector.extract_strided_slice %87 {offsets = [0, 4], sizes = [32, 128], strides = [1, 1]} : vector<32x132xf32> to vector<32x128xf32>
    %93 = tpu.concatenate %88, %89, %90, %91, %92 in 0 : vector<32x128xf32>, vector<32x128xf32>, vector<32x128xf32>, vector<32x128xf32>, vector<32x128xf32> -> vector<160x128xf32>
    %94 = arith.truncf %93 : vector<160x128xf32> to vector<160x128xbf16>
    %cst_44 = arith.constant dense<0.000000e+00> : vector<8x128xf32>
    %95 = tpu.matmul %85, %94, %cst_44 {dimension_numbers = #tpu.dot_dimension_numbers<[1], [0], [0], [1], [0, 0, 1, 1], [], []>} : vector<8x160xbf16>, vector<160x128xbf16>, vector<8x128xf32> -> vector<8x128xf32>
    %c0_45 = arith.constant 0 : index
    %c0_46 = arith.constant 0 : index
    %96 = vector.load %arg7[%c0_45, %c0_46] : memref<8x1xf32, #tpu.memory_space<vmem>>, vector<8x1xf32>
    %97 = vector.broadcast %96 : vector<8x1xf32> to vector<8x128xf32>
    %98 = arith.addf %95, %97 : vector<8x128xf32>
    %c0_47 = arith.constant 0 : index
    %c0_48 = arith.constant 0 : index
    %c0_49 = arith.constant 0 : index
    %99 = vector.load %arg8[%c0_47, %c0_48, %c0_49] : memref<1x8x128xf32, #tpu.memory_space<vmem>>, vector<1x8x128xf32>
    %100 = vector.shape_cast %99 : vector<1x8x128xf32> to vector<8x128xf32>
    %101 = vector.shape_cast %98 : vector<8x128xf32> to vector<1x8x128xf32>
    tpu.vector_store %arg8[%c0_47, %c0_48, %c0_49], %101 {strides = array<i32>} : memref<1x8x128xf32, #tpu.memory_space<vmem>>, vector<1x8x128xf32>,
    return
  }
  func.func @transform_0(%arg0: i32) -> (i32, i32, i32) {
    %c0_i32 = arith.constant 0 : i32
    %c0_i32_0 = arith.constant 0 : i32
    %c0_i32_1 = arith.constant 0 : i32
    return %arg0, %c0_i32, %c0_i32_0 : i32, i32, i32
  }
  func.func @transform_1(%arg0: i32) -> (i32, i32) {
    %c0_i32 = arith.constant 0 : i32
    %c0_i32_0 = arith.constant 0 : i32
    %c0_i32_1 = arith.constant 0 : i32
    return %c0_i32, %c0_i32_0 : i32, i32
  }
  func.func @transform_2(%arg0: i32) -> (i32, i32, i32) {
    %c0_i32 = arith.constant 0 : i32
    %c0_i32_0 = arith.constant 0 : i32
    %c0_i32_1 = arith.constant 0 : i32
    %c0_i32_2 = arith.constant 0 : i32
    return %c0_i32, %c0_i32_0, %c0_i32_1 : i32, i32, i32
  }
  func.func @transform_3(%arg0: i32) -> (i32, i32) {
    %c0_i32 = arith.constant 0 : i32
    %c0_i32_0 = arith.constant 0 : i32
    %c0_i32_1 = arith.constant 0 : i32
    return %c0_i32, %c0_i32_0 : i32, i32
  }
  func.func @transform_4(%arg0: i32) -> (i32, i32, i32) {
    %c0_i32 = arith.constant 0 : i32
    %c0_i32_0 = arith.constant 0 : i32
    %c0_i32_1 = arith.constant 0 : i32
    %c0_i32_2 = arith.constant 0 : i32
    return %c0_i32, %c0_i32_0, %c0_i32_1 : i32, i32, i32
  }
  func.func @transform_5(%arg0: i32) -> (i32, i32, i32) {
    %c0_i32 = arith.constant 0 : i32
    %c0_i32_0 = arith.constant 0 : i32
    %c0_i32_1 = arith.constant 0 : i32
    %c0_i32_2 = arith.constant 0 : i32
    return %c0_i32, %c0_i32_0, %c0_i32_1 : i32, i32, i32
  }
  func.func @transform_6(%arg0: i32) -> (i32, i32) {
    %c0_i32 = arith.constant 0 : i32
    %c0_i32_0 = arith.constant 0 : i32
    %c0_i32_1 = arith.constant 0 : i32
    return %c0_i32, %c0_i32_0 : i32, i32
  }
  func.func @transform_7(%arg0: i32) -> (i32, i32, i32) {
    %c0_i32 = arith.constant 0 : i32
    %c0_i32_0 = arith.constant 0 : i32
    %c0_i32_1 = arith.constant 0 : i32
    return %arg0, %c0_i32, %c0_i32_0 : i32, i32, i32
  }
}

</mosaic_0001>

<bundles_post_ra>
// kernel: tpu_custom_call.1
= control target key start
LH: loop header
LB: loop body
LE: loop exit
PB: predicated region body
PF: predicated region fallthrough
CT: control target
= control target key end

     0   :  { %12 = vsyncpa [#allocation3], 0  ;;  %s2838_s0 = inlined_call_operand.vmem [shape: f32[2,8,128], index: 0, kind: input, shape index: {}]   ;;  %s2839_s1 = inlined_call_operand.vmem [shape: bf16[32,40], index: 1, kind: input, shape index: {}]   ;;  %s2840_s2 = inlined_call_operand.vmem [shape: bf16[3,32,160], index: 2, kind: input, shape index: {}]   ;;  %s2841_s3 = inlined_call_operand.vmem [shape: bf16[8,160], index: 3, kind: input, shape index: {}]   ;;  %s2842_s4 = inlined_call_operand.vmem [shape: f32[4,32,1], index: 4, kind: input, shape index: {}]   ;;  %s2843_s5 = inlined_call_operand.vmem [shape: f32[4,32,1], index: 5, kind: input, shape index: {}]   ;;  %s2844_s6 = inlined_call_operand.vmem [shape: f32[8,1], index: 6, kind: input, shape index: {}]   ;;  %s2845_s7 = inlined_call_operand.hbm [shape: f32[2,8,128], index: 7, kind: output, shape index: {}]  }
   0x1   :  { %14 = vsyncpa [#allocation3 + $0x1], 0  ;;  %s2237_s24 = smov 0   ;;  %s2239_s25 = smov 0  }
   0x2   :  { %s2241_s26 = smov 0   ;;  %s2243_s27 = smov 0  }
   0x3 LB: > { %s2258_s28 = sadd.s32 4294967295, %s2187_s27   ;;  %s1518_s29 = sadd.s32 4294967294, %s2187_s27   ;;  %s2187_s27 = sphi %s2243_s27, %s2867_s27   ;;  %s2183_s26 = sphi %s2241_s26, %s2866_s26   ;;  %s2179_s25 = sphi %s2239_s25, %s2865_s25   ;;  %s2175_s24 = sphi %s2237_s24, %s2864_s24  }
   0x4   : > { %s2262_s30 = sadd.s32 1, %s2187_s27   ;;  %s179_s8 = sadd.s32 1, %s2183_s26 }
   0x5   : > { %s176_s9 = ssub.s32 %s2187_s27, %s2262_s30  ;;  %p189_p0 = scmp.ne.s32.totalorder %s2183_s26, %s2179_s25 }
   0x6   : > { %p177_p1 = scmp.eq.s32.totalorder %s176_s9, 0  ;;  %p190_p2 = scmp.eq.s32.totalorder %s2258_s28, 1 }
   0x7   : > { %p195_p3 = scmp.ne.s32.totalorder %s2179_s25, %s2175_s24  ;;  %p196_p4 = scmp.eq.s32.totalorder %s1518_s29, 1 }
   0x8   : > { %s2273_s10 = scalar_select %p177_p1, %s2183_s26, %s179_s8  }
   0x9   : > { %p2275_p5 = por %p190_p2, %p189_p0  ;;  %p2279_p6 = por %p196_p4, %p195_p3 }
   0xa   : > { %p1521_p7 = scmp.ge.s32.totalorder %s2187_s27, 1  ;;  %p239_p8 = scmp.lt.s32.totalorder %s2187_s27, 3 }
   0xc   : > { %p240_p9 = pnand %p1521_p7, %p239_p8 }
   0xd   : > { %p270_p10 = scmp.lt.s32.totalorder (!%p240_p9), %s2258_s28, 1  ;;  %s2189_s18 = smov (!%p240_p9), 4  }
   0xe   : > { %243 = sbr.rel (%p240_p9) target bundleno = 2491 (0x9bb), region = 48  ;;  %s2850_s19 = smov (!%p240_p9), 126  }
   0xf   : > { %s2846_s20 = smov (!%p240_p9), 124   ;;  %s2852_s23 = smov (!%p240_p9), 125  }
  0x10   : > { %s2848_s29 = smov (!%p240_p9), 127   ;;  %s2858_s21 = smov (!%p240_p9), 124  }
  0x13   : > { %s271_s13 = scalar_select %p270_p10, %s2258_s28, 1  ;;  %vm284_vm0 = vcmask 31744   ;;  %v2073_v4 = vld [vmem:[%s2839_s1] sm:$0xff]   ;;  %vm328_vm1 = vcmask 326656   ;;  %v2194_v5 = vmov 0   ;;  %v390_v6 = vld [vmem:[%s2842_s4 + $0x10] sm:$0xff] }
  0x14   : > { %1640 = vmatprep.mubr.msk.bf16.mxu0 %vm328_vm1, %v2073_v4  ;;  %1711 = vset.pattern.permute.xlu1 %v2194_v5  ;;  %v391_v7 = vld [vmem:[%s2842_s4 + $0x18] sm:$0xff]  ;;  %v418_v8 = vld [vmem:[%s2843_s5 + $0x10] sm:$0xff]  ;;  %v388_v9 = vld [vmem:[%s2842_s4] sm:$0xff]  ;;  %vm312_vm2 = vcmask 1014784   ;;  %vm335_vm3 = vcmask 1043456   ;;  %vm291_vm4 = vcmask 1039360  }
  0x15   : > { %s1523_s14 = sshll.u32 %s271_s13, 3  ;;  %1712 = vset.pattern.permute.xlu0 %v2194_v5  ;;  %607 = vmatprep.subr.bf16.mxu1 %v2194_v5  ;;  %v419_v10 = vld [vmem:[%s2843_s5 + $0x18] sm:$0xff]  ;;  %v416_v11 = vld [vmem:[%s2843_s5] sm:$0xff]  ;;  %v389_v12 = vld [vmem:[%s2842_s4 + $0x8] sm:$0xff]  ;;  %vm298_vm5 = vcmask 1031168   ;;  %vm305_vm6 = vcmask 1022976  }
  0x16   : > { %s273_s17 = scalar_lea.vmem %s2838_s0, %s1523_s14  ;;  %v417_v13 = vld [vmem:[%s2843_s5 + $0x8] sm:$0xff]  ;;  %vm2333_vm7 = vmneg %vm284_vm0  ;;  %vm2195_vm8 = vmmov 1   ;;  %vm600_vm10 = vcmask 261120   ;;  %s2861_s14 = smov 127  }
  0x17   : > { %v275_v0 = vld [vmem:[%s273_s17] sm:$0xff]  ;;  %vm1527_vm9 = vmpackc.low %vm2195_vm8, %vm2333_vm7  ;;  %v2074_v35 = vld [vmem:[%s2839_s1 + $0x8] sm:$0xff]   ;;  %s2862_s17 = smov 126  }
  0x18   : > { %281 = vrot.lane.b32.xlu0 %v275_v0, %s2189_s18  ;;  %vm2438_vm11 = vmpackc.low %vm2333_vm7, %vm2333_vm7 }
  0x8a   : > { %v2291_v1 = vpop.permute.xlu0 %281 }
  0x8b   : > { %v285_v2 = vsel %vm284_vm0, 0.0, %v2291_v1 }
  0x8c   : > { %v1696_v3 = vpack.i.bf16 %v2291_v1, %v285_v2 }
  0x8e   : > { %1697 = vrot.lane.b32.xlu1 %v1696_v3, %s2850_s19  ;;  %1692 = vrot.lane.b32.xlu0 %v1696_v3, %s2846_s20  ;;  %s1626_s20 = sshll.u32 %s2258_s28, 7 }
  0x8f   : > { %s2797_s9 = scalar_lea.hbm %s2845_s7, %s1626_s20 }
  0x92   : > { %1702 = vrot.lane.b32.xlu1 %v1696_v3, %s2852_s23  ;;  %1707 = vrot.lane.b32.xlu0 %v1696_v3, %s2848_s29 }
  0x96   : > { %404 = vperm.xlu1 %1711, %v390_v6   ;;  %409 = vperm.xlu0 %1712, %v391_v7  }
  0x9a   : > { %432 = vperm.xlu1 %1711, %v418_v8   ;;  %394 = vperm.xlu0 %1712, %v388_v9  }
  0x9e   : > { %437 = vperm.xlu1 %1711, %v419_v10   ;;  %422 = vperm.xlu0 %1712, %v416_v11  }
  0xa2   : > { %399 = vperm.xlu1 %1711, %v389_v12  }
  0xa6   : > { %427 = vperm.xlu1 %1711, %v417_v13  }
 0x100   : > { %v1698_v14 = vpop.permute.xlu1 %1697  ;;  %v1693_v15 = vpop.permute.xlu0 %1692 }
 0x101   : > { %v1695_v16 = vunpack.i.h.bf16 %v1693_v15  ;;  %v1694_v17 = vunpack.i.l.bf16 %v1693_v15  ;;  %v1700_v18 = vunpack.i.h.bf16 %v1698_v14  ;;  %v1699_v19 = vunpack.i.l.bf16 %v1698_v14  ;;  %v2077_v15 = vld [vmem:[%s2840_s2 + $0x4] ss:$8 sps:$4 sm:$0xff]  }
 0x102   : > { %1546 = vmatprep.mubr.msk.bf16.mxu1 %vm600_vm10, %v2077_v15 }
 0x103   : > { %v313_v20 = vsel %vm312_vm2, %v1694_v17, %v1695_v16  ;;  %v299_v31 = vsel %vm298_vm5, %v1699_v19, %v1700_v18  ;;  %v1551_v16 = vld [vmem:[%s2842_s4 + $0x38] sm:$0xff]  ;;  %v1550_v17 = vld [vmem:[%s2842_s4 + $0x30] sm:$0xff] }
 0x104   : > { %v1703_v21 = vpop.permute.xlu1 %1702  ;;  %v1708_v22 = vpop.permute.xlu0 %1707  ;;  %v317_v23 = vpack.c.bf16 %v313_v20, %v313_v20  ;;  %v1555_v18 = vld [vmem:[%s2843_s5 + $0x38] sm:$0xff]  ;;  %v1554_v19 = vld [vmem:[%s2843_s5 + $0x30] sm:$0xff]  ;;  %v1549_v20 = vld [vmem:[%s2842_s4 + $0x28] sm:$0xff] }
 0x105   : > { %v1705_v24 = vunpack.i.h.bf16 %v1703_v21  ;;  %v1704_v25 = vunpack.i.l.bf16 %v1703_v21  ;;  %v1710_v26 = vunpack.i.h.bf16 %v1708_v22  ;;  %v1709_v27 = vunpack.i.l.bf16 %v1708_v22  ;;  %v1548_v21 = vld [vmem:[%s2842_s4 + $0x20] sm:$0xff]  ;;  %v1553_v22 = vld [vmem:[%s2843_s5 + $0x28] sm:$0xff] }
 0x106   : > { %1644 = vmatprep.subr.msk.bf16.mxu0 %vm335_vm3, %v317_v23  ;;  %v337_v28 = vsel %vm335_vm3, %v317_v23, 0  ;;  %v1552_v23 = vld [vmem:[%s2843_s5 + $0x20] sm:$0xff] }
 0x107   : > { %v292_v30 = vsel %vm291_vm4, %v1709_v27, %v1710_v26  ;;  %1635 = vmatpush3.bf16.msra.mxu0 %v337_v28  ;;  %v306_v32 = vsel %vm305_vm6, %v1704_v25, %v1705_v24 }
 0x108   : > { %v316_v33 = vpack.c.bf16 %v306_v32, %v299_v31  ;;  %v1528_v34 = vpack.c.bf16 %v292_v30, %v2291_v1 }
 0x10a   : > { %1636 = vmatprep.subr.bf16.mxu0 %v316_v33 }
 0x10b   : > { %1637 = vmatpush3.bf16.msra.mxu0 %v316_v33 }
 0x10c   : > { %1638 = vmatprep.subr.msk.bf16.mxu0 %vm1527_vm9, %v1528_v34 }
 0x10f   : > { %1639 = vmatpush3.bf16.msk.msra.mxu0 %vm1527_vm9, %v1528_v34 }
 0x110   : > { %877 = vmatprep.subr.bf16.mxu0 %v2194_v5 }
 0x111   : > { %v405_v36 = vpop.permute.xlu1 %404  ;;  %v410_v38 = vpop.permute.xlu0 %409 }
 0x112   : > { %1641 = vmatmul.mubr.msk.bf16.vlgmr.msra.gmra.mxu0 %vm328_vm1, %v2074_v35 }
 0x115   : > { %v433_v37 = vpop.permute.xlu1 %432  ;;  %v395_v40 = vpop.permute.xlu0 %394 }
 0x119   : > { %v438_v39 = vpop.permute.xlu1 %437  ;;  %v423_v48 = vpop.permute.xlu0 %422 }
 0x11d   : > { %v400_v43 = vpop.permute.xlu1 %399 }
 0x121   : > { %v428_v54 = vpop.permute.xlu1 %427 }
 0x1d2   : > { %v1642_v41 = vpop.f32.mrf.mxu0 }
 0x1d3   : > { %v414_v42 = vmul.f32 %v1642_v41, %v405_v36 }
 0x1d4   : > { %v373_v44 = vpop.f32.mrf.mxu0 }
 0x1d5   : > { %v412_v45 = vmul.f32 %v395_v40, %v373_v44  ;;  %v442_v46 = vadd.f32 %v433_v37, %v414_v42 }
 0x1d6   : > { %v1643_v47 = vpop.f32.mrf.mxu0 }
 0x1d7   : > { %v415_v49 = vmul.f32 %v1643_v47, %v410_v38  ;;  %v440_v50 = vadd.f32 %v423_v48, %v412_v45  ;;  %2095 = vtanh.f32 %v442_v46 }
 0x1d8   : > { %v376_v51 = vpop.f32.mrf.mxu0 }
 0x1d9   : > { %v443_v52 = vadd.f32 %v438_v39, %v415_v49  ;;  %v413_v53 = vmul.f32 %v400_v43, %v376_v51 }
 0x1db   : > { %2097 = vtanh.f32 %v443_v52  ;;  %v441_v55 = vadd.f32 %v428_v54, %v413_v53 }
 0x1dc   : > { %2099 = vtanh.f32 %v440_v50 }
 0x1dd   : > { %2101 = vtanh.f32 %v441_v55 }
 0x1e4   : > { %v2096_v56 = vpop.eup %2095 }
 0x1e8   : > { %v2098_v57 = vpop.eup %2097 }
 0x1e9   : > { %v2100_v58 = vpop.eup %2099  ;;  %v1713_v59 = vpack.i.bf16 %v2098_v57, %v2096_v56 }
 0x1ea   : > { %v2102_v60 = vpop.eup %2101 }
 0x1eb   : > { %1714 = vrot.lane.b32.xlu0 %v1713_v59, %s2189_s18  ;;  %v1718_v61 = vpack.i.bf16 %v2102_v60, %v2100_v58 }
 0x1ed   : > { %1719 = vrot.lane.b32.xlu1 %v1718_v61, %s2189_s18 }
 0x25d   : > { %v1715_v62 = vpop.permute.xlu0 %1714 }
 0x25e   : > { %v2350_v63 = vunpack.i.h.bf16 %v1715_v62  ;;  %v2352_v0 = vunpack.i.l.bf16 %v1715_v62 }
 0x25f   : > { %v1720_v1 = vpop.permute.xlu1 %1719 }
 0x260   : > { %v2354_v2 = vunpack.i.h.bf16 %v1720_v1  ;;  %v2356_v3 = vunpack.i.l.bf16 %v1720_v1  ;;  %v470_v4 = vsel %vm284_vm0, 0.0, %v2352_v0  ;;  %v471_v6 = vsel %vm284_vm0, 0.0, %v2350_v63 }
 0x261   : > { %v1723_v7 = vpack.i.bf16 %v2352_v0, %v470_v4  ;;  %v1738_v8 = vpack.i.bf16 %v2350_v63, %v471_v6  ;;  %v1539_v13 = vpack.c.bf16 %v2350_v63, %v2352_v0 }
 0x262   : > { %v469_v9 = vsel %vm284_vm0, 0.0, %v2354_v2  ;;  %v468_v10 = vsel %vm284_vm0, 0.0, %v2356_v3  ;;  %v1544_v14 = vpack.c.bf16 %v2354_v2, %v2356_v3 }
 0x263   : > { %1724 = vrot.lane.b32.xlu0 %v1723_v7, %s2852_s23  ;;  %1739 = vrot.lane.b32.xlu1 %v1738_v8, %s2852_s23  ;;  %v1743_v11 = vpack.i.bf16 %v2354_v2, %v469_v9  ;;  %v1728_v12 = vpack.i.bf16 %v2356_v3, %v468_v10  ;;  %v2078_v2 = vld [vmem:[%s2840_s2 + $0x14] ss:$8 sps:$4 sm:$0xff]   ;;  %v2080_v3 = vld [vmem:[%s2840_s2 + $0x10] ss:$8 sps:$4 sm:$0xff]  }
 0x267   : > { %1744 = vrot.lane.b32.xlu1 %v1743_v11, %s2852_s23  ;;  %1729 = vrot.lane.b32.xlu0 %v1728_v12, %s2852_s23 }
 0x26b   : > { %1749 = vrot.lane.b32.xlu1 %v1738_v8, %s2850_s19  ;;  %1734 = vrot.lane.b32.xlu0 %v1723_v7, %s2850_s19 }
 0x26f   : > { %1764 = vrot.lane.b32.xlu1 %v1743_v11, %s2850_s19  ;;  %1754 = vrot.lane.b32.xlu0 %v1728_v12, %s2850_s19 }
 0x273   : > { %1769 = vrot.lane.b32.xlu1 %v1738_v8, %s2848_s29  ;;  %1759 = vrot.lane.b32.xlu0 %v1723_v7, %s2848_s29 }
 0x277   : > { %1779 = vrot.lane.b32.xlu1 %v1743_v11, %s2848_s29  ;;  %1774 = vrot.lane.b32.xlu0 %v1728_v12, %s2848_s29 }
 0x27b   : > { %1789 = vrot.lane.b32.xlu1 %v1738_v8, %s2858_s21  ;;  %1784 = vrot.lane.b32.xlu0 %v1723_v7, %s2858_s21 }
 0x27f   : > { %1799 = vrot.lane.b32.xlu1 %v1743_v11, %s2858_s21  ;;  %1794 = vrot.lane.b32.xlu0 %v1728_v12, %s2858_s21 }
 0x283   : > { %678 = vperm.xlu1 %1711, %v1551_v16   ;;  %673 = vperm.xlu0 %1712, %v1550_v17  }
 0x287   : > { %707 = vperm.xlu1 %1711, %v1555_v18   ;;  %702 = vperm.xlu0 %1712, %v1554_v19  }
 0x28b   : > { %668 = vperm.xlu1 %1711, %v1549_v20   ;;  %663 = vperm.xlu0 %1712, %v1548_v21  }
 0x28f   : > { %697 = vperm.xlu1 %1711, %v1553_v22   ;;  %692 = vperm.xlu0 %1712, %v1552_v23  }
 0x2d5   : > { %v1725_v24 = vpop.permute.xlu0 %1724  ;;  %v1740_v25 = vpop.permute.xlu1 %1739 }
 0x2d6   : > { %v1727_v26 = vunpack.i.h.bf16 %v1725_v24  ;;  %v1726_v27 = vunpack.i.l.bf16 %v1725_v24  ;;  %v1742_v28 = vunpack.i.h.bf16 %v1740_v25  ;;  %v1741_v30 = vunpack.i.l.bf16 %v1740_v25 }
 0x2d8   : > { %v542_v31 = vsel %vm305_vm6, %v1726_v27, %v1727_v26  ;;  %v543_v32 = vsel %vm305_vm6, %v1741_v30, %v1742_v28 }
 0x2d9   : > { %v1745_v33 = vpop.permute.xlu1 %1744  ;;  %v1730_v34 = vpop.permute.xlu0 %1729  ;;  %v579_v35 = vpack.c.bf16 %v543_v32, %v542_v31 }
 0x2da   : > { %v1747_v36 = vunpack.i.h.bf16 %v1745_v33  ;;  %v1746_v37 = vunpack.i.l.bf16 %v1745_v33  ;;  %v1732_v38 = vunpack.i.h.bf16 %v1730_v34  ;;  %v1731_v39 = vunpack.i.l.bf16 %v1730_v34 }
 0x2db   : > { %608 = vmatpush1.bf16.msra.mxu1 %v579_v35 }
 0x2dc   : > { %609 = vmatprep.subr.bf16.mxu1 %v2194_v5  ;;  %v540_v40 = vsel %vm305_vm6, %v1731_v39, %v1732_v38  ;;  %v541_v41 = vsel %vm305_vm6, %v1746_v37, %v1747_v36  ;;  %v2075_v38 = vld [vmem:[%s2840_s2] ss:$8 sps:$4 sm:$0xff]  }
 0x2dd   : > { %v1750_v42 = vpop.permute.xlu1 %1749  ;;  %v1735_v43 = vpop.permute.xlu0 %1734  ;;  %v578_v44 = vpack.c.bf16 %v541_v41, %v540_v40 }
 0x2de   : > { %v1752_v45 = vunpack.i.h.bf16 %v1750_v42  ;;  %v1751_v46 = vunpack.i.l.bf16 %v1750_v42  ;;  %v1737_v47 = vunpack.i.h.bf16 %v1735_v43  ;;  %v1736_v48 = vunpack.i.l.bf16 %v1735_v43 }
 0x2df   : > { %610 = vmatpush1.bf16.msra.mxu1 %v578_v44 }
 0x2e0   : > { %611 = vmatprep.subr.bf16.mxu1 %v2194_v5  ;;  %v518_v49 = vsel %vm298_vm5, %v1736_v48, %v1737_v47  ;;  %v519_v50 = vsel %vm298_vm5, %v1751_v46, %v1752_v45 }
 0x2e1   : > { %v1765_v51 = vpop.permute.xlu1 %1764  ;;  %v1755_v52 = vpop.permute.xlu0 %1754  ;;  %v577_v53 = vpack.c.bf16 %v519_v50, %v518_v49 }
 0x2e2   : > { %v1767_v54 = vunpack.i.h.bf16 %v1765_v51  ;;  %v1766_v55 = vunpack.i.l.bf16 %v1765_v51  ;;  %v1757_v56 = vunpack.i.h.bf16 %v1755_v52  ;;  %v1756_v57 = vunpack.i.l.bf16 %v1755_v52 }
 0x2e3   : > { %612 = vmatpush1.bf16.msra.mxu1 %v577_v53 }
 0x2e4   : > { %613 = vmatprep.subr.bf16.mxu1 %v2194_v5  ;;  %v516_v58 = vsel %vm298_vm5, %v1756_v57, %v1757_v56  ;;  %v517_v59 = vsel %vm298_vm5, %v1766_v55, %v1767_v54 }
 0x2e5   : > { %v1770_v60 = vpop.permute.xlu1 %1769  ;;  %v1760_v61 = vpop.permute.xlu0 %1759  ;;  %v576_v62 = vpack.c.bf16 %v517_v59, %v516_v58 }
 0x2e6   : > { %v1772_v1 = vunpack.i.h.bf16 %v1770_v60  ;;  %v1771_v4 = vunpack.i.l.bf16 %v1770_v60  ;;  %v1762_v6 = vunpack.i.h.bf16 %v1760_v61  ;;  %v1761_v7 = vunpack.i.l.bf16 %v1760_v61 }
 0x2e7   : > { %614 = vmatpush1.bf16.msra.mxu1 %v576_v62 }
 0x2e8   : > { %615 = vmatprep.subr.bf16.mxu1 %v2194_v5  ;;  %v494_v8 = vsel %vm291_vm4, %v1761_v7, %v1762_v6  ;;  %v495_v9 = vsel %vm291_vm4, %v1771_v4, %v1772_v1 }
 0x2e9   : > { %v1780_v10 = vpop.permute.xlu1 %1779  ;;  %v1775_v11 = vpop.permute.xlu0 %1774  ;;  %v575_v12 = vpack.c.bf16 %v495_v9, %v494_v8 }
 0x2ea   : > { %v1782_v15 = vunpack.i.h.bf16 %v1780_v10  ;;  %v1781_v16 = vunpack.i.l.bf16 %v1780_v10  ;;  %v1777_v17 = vunpack.i.h.bf16 %v1775_v11  ;;  %v1776_v18 = vunpack.i.l.bf16 %v1775_v11 }
 0x2eb   : > { %616 = vmatpush1.bf16.msra.mxu1 %v575_v12 }
 0x2ec   : > { %617 = vmatprep.subr.bf16.mxu1 %v2194_v5  ;;  %v492_v19 = vsel %vm291_vm4, %v1776_v18, %v1777_v17  ;;  %v493_v20 = vsel %vm291_vm4, %v1781_v16, %v1782_v15 }
 0x2ed   : > { %v1790_v21 = vpop.permute.xlu1 %1789  ;;  %v1785_v22 = vpop.permute.xlu0 %1784  ;;  %v574_v23 = vpack.c.bf16 %v493_v20, %v492_v19 }
 0x2ee   : > { %v1792_v25 = vunpack.i.h.bf16 %v1790_v21  ;;  %v1791_v26 = vunpack.i.l.bf16 %v1790_v21  ;;  %v1787_v27 = vunpack.i.h.bf16 %v1785_v22  ;;  %v1786_v28 = vunpack.i.l.bf16 %v1785_v22 }
 0x2ef   : > { %618 = vmatpush1.bf16.msra.mxu1 %v574_v23 }
 0x2f0   : > { %619 = vmatprep.subr.bf16.mxu1 %v2194_v5  ;;  %v566_v29 = vsel %vm312_vm2, %v1786_v28, %v1787_v27  ;;  %v567_v32 = vsel %vm312_vm2, %v1791_v26, %v1792_v25  ;;  %v2081_v28 = vld [vmem:[%s2840_s2 + $0x24] ss:$8 sps:$4 sm:$0xff]  }
 0x2f1   : > { %v1800_v30 = vpop.permute.xlu1 %1799  ;;  %v1795_v31 = vpop.permute.xlu0 %1794  ;;  %v581_v63 = vpack.c.bf16 %v567_v32, %v566_v29  ;;  %1574 = vmatprep.mubr.msk.bf16.mxu0 %vm600_vm10, %v2081_v28  ;;  %v1583_v29 = vld [vmem:[%s2843_s5 + $0x58] sm:$0xff]  ;;  %v1582_v32 = vld [vmem:[%s2843_s5 + $0x50] sm:$0xff] }
 0x2f2   : > { %v1802_v33 = vunpack.i.h.bf16 %v1800_v30  ;;  %v1801_v34 = vunpack.i.l.bf16 %v1800_v30  ;;  %v1797_v35 = vunpack.i.h.bf16 %v1795_v31  ;;  %v1796_v36 = vunpack.i.l.bf16 %v1795_v31  ;;  %v1579_v30 = vld [vmem:[%s2842_s4 + $0x58] sm:$0xff]  ;;  %v1578_v31 = vld [vmem:[%s2842_s4 + $0x50] sm:$0xff] }
 0x2f3   : > { %1540 = vmatpush1.bf16.msk.msra.mxu1 %vm2438_vm11, %v1539_v13 }
 0x2f4   : > { %621 = vmatprep.subr.bf16.mxu1 %v2194_v5  ;;  %v564_v0 = vsel %vm312_vm2, %v1796_v36, %v1797_v35  ;;  %v565_v13 = vsel %vm312_vm2, %v1801_v34, %v1802_v33  ;;  %v1577_v33 = vld [vmem:[%s2842_s4 + $0x48] sm:$0xff]  ;;  %v1576_v34 = vld [vmem:[%s2842_s4 + $0x40] sm:$0xff] }
 0x2f5   : > { %v580_v37 = vpack.c.bf16 %v565_v13, %v564_v0  ;;  %v1581_v35 = vld [vmem:[%s2843_s5 + $0x48] sm:$0xff]  ;;  %v1580_v36 = vld [vmem:[%s2843_s5 + $0x40] sm:$0xff] }
 0x2f7   : > { %1545 = vmatpush1.bf16.msk.msra.mxu1 %vm2438_vm11, %v1544_v14 }
 0x2f8   : > { %635 = vmatprep.subr.bf16.mxu1 %v2194_v5 }
 0x2fb   : > { %636 = vmatpush2.bf16.msra.mxu1 %v581_v63 }
 0x2fc   : > { %637 = vmatprep.subr.bf16.mxu1 %v2194_v5 }
 0x2fe   : > { %v674_v14 = vpop.permute.xlu0 %673  ;;  %v679_v39 = vpop.permute.xlu1 %678 }
 0x2ff   : > { %638 = vmatpush2.bf16.msra.mxu1 %v580_v37 }
 0x300   : > { %1147 = vmatprep.subr.bf16.mxu1 %v2194_v5 }
 0x302   : > { %640 = vmatmul.mubr.bf16.vlgmr.msra.gmra.mxu1 %v2075_v38  ;;  %v703_v40 = vpop.permute.xlu0 %702  ;;  %v708_v41 = vpop.permute.xlu1 %707 }
 0x303   : > { %1547 = vmatprep.mubr.msk.bf16.mxu1 %vm600_vm10, %v2078_v2 }
 0x306   : > { %v664_v42 = vpop.permute.xlu0 %663  ;;  %v669_v43 = vpop.permute.xlu1 %668 }
 0x30a   : > { %648 = vmatmul.mubr.bf16.gmra.mxu1 %v2080_v3  ;;  %v693_v47 = vpop.permute.xlu0 %692  ;;  %v698_v51 = vpop.permute.xlu1 %697 }
 0x3c2   : > { %v641_v44 = vpop.f32.mrf.mxu1 }
 0x3c3   : > { %v681_v45 = vmul.f32 %v664_v42, %v641_v44 }
 0x3c4   : > { %v643_v46 = vpop.f32.mrf.mxu1 }
 0x3c5   : > { %v710_v48 = vadd.f32 %v693_v47, %v681_v45 }
 0x3c6   : > { %v644_v49 = vpop.f32.mrf.mxu1 }
 0x3c7   : > { %v682_v50 = vmul.f32 %v669_v43, %v644_v49  ;;  %2103 = vtanh.f32 %v710_v48 }
 0x3c8   : > { %v646_v52 = vpop.f32.mrf.mxu1 }
 0x3c9   : > { %v711_v53 = vadd.f32 %v698_v51, %v682_v50 }
 0x3ca   : > { %v649_v54 = vpop.f32.mrf.mxu1 }
 0x3cb   : > { %2105 = vtanh.f32 %v711_v53  ;;  %v683_v55 = vmul.f32 %v674_v14, %v649_v54 }
 0x3cc   : > { %v651_v56 = vpop.f32.mrf.mxu1 }
 0x3cd   : > { %v712_v57 = vadd.f32 %v703_v40, %v683_v55 }
 0x3ce   : > { %v652_v58 = vpop.f32.mrf.mxu1 }
 0x3cf   : > { %v684_v59 = vmul.f32 %v679_v39, %v652_v58  ;;  %2107 = vtanh.f32 %v712_v57 }
 0x3d0   : > { %v654_v60 = vpop.f32.mrf.mxu1 }
 0x3d1   : > { %v713_v61 = vadd.f32 %v708_v41, %v684_v59 }
 0x3d3   : > { %2109 = vtanh.f32 %v713_v61 }
 0x3d4   : > { %v2104_v62 = vpop.eup %2103 }
 0x3d8   : > { %v2106_v1 = vpop.eup %2105 }
 0x3d9   : > { %v1808_v4 = vpack.i.bf16 %v2106_v1, %v2104_v62 }
 0x3db   : > { %1809 = vrot.lane.b32.xlu1 %v1808_v4, %s2189_s18 }
 0x3dc   : > { %v2108_v6 = vpop.eup %2107 }
 0x3e0   : > { %v2110_v7 = vpop.eup %2109 }
 0x3e1   : > { %v1803_v8 = vpack.i.bf16 %v2110_v7, %v2108_v6 }
 0x3e3   : > { %1804 = vrot.lane.b32.xlu0 %v1803_v8, %s2189_s18 }
 0x44d   : > { %v1810_v9 = vpop.permute.xlu1 %1809 }
 0x44e   : > { %v2473_v10 = vunpack.i.h.bf16 %v1810_v9  ;;  %v2475_v11 = vunpack.i.l.bf16 %v1810_v9 }
 0x450   : > { %v1572_v12 = vpack.c.bf16 %v2473_v10, %v2475_v11  ;;  %v740_v23 = vsel %vm284_vm0, 0.0, %v2473_v10  ;;  %v739_v25 = vsel %vm284_vm0, 0.0, %v2475_v11 }
 0x451   : > { %v1828_v26 = vpack.i.bf16 %v2473_v10, %v740_v23  ;;  %v1818_v27 = vpack.i.bf16 %v2475_v11, %v739_v25  ;;  %v2084_v10 = vld [vmem:[%s2840_s2 + $0x34] ss:$8 sps:$4 sm:$0xff]   ;;  %v2086_v11 = vld [vmem:[%s2840_s2 + $0x30] ss:$8 sps:$4 sm:$0xff]  }
 0x455   : > { %v1805_v15 = vpop.permute.xlu0 %1804 }
 0x456   : > { %v2479_v16 = vunpack.i.h.bf16 %v1805_v15  ;;  %v2481_v17 = vunpack.i.l.bf16 %v1805_v15 }
 0x458   : > { %v742_v18 = vsel %vm284_vm0, 0.0, %v2479_v16  ;;  %v741_v19 = vsel %vm284_vm0, 0.0, %v2481_v17  ;;  %v1567_v20 = vpack.c.bf16 %v2479_v16, %v2481_v17 }
 0x459   : > { %v1823_v21 = vpack.i.bf16 %v2479_v16, %v742_v18  ;;  %v1813_v22 = vpack.i.bf16 %v2481_v17, %v741_v19 }
 0x45b   : > { %1824 = vrot.lane.b32.xlu1 %v1823_v21, %s2852_s23  ;;  %1814 = vrot.lane.b32.xlu0 %v1813_v22, %s2852_s23 }
 0x45f   : > { %1829 = vrot.lane.b32.xlu1 %v1828_v26, %s2852_s23  ;;  %1819 = vrot.lane.b32.xlu0 %v1818_v27, %s2852_s23 }
 0x463   : > { %1844 = vrot.lane.b32.xlu1 %v1823_v21, %s2850_s19  ;;  %1834 = vrot.lane.b32.xlu0 %v1813_v22, %s2850_s19 }
 0x467   : > { %1849 = vrot.lane.b32.xlu1 %v1828_v26, %s2850_s19  ;;  %1839 = vrot.lane.b32.xlu0 %v1818_v27, %s2850_s19 }
 0x46b   : > { %1864 = vrot.lane.b32.xlu1 %v1823_v21, %s2861_s14  ;;  %1854 = vrot.lane.b32.xlu0 %v1813_v22, %s2861_s14 }
 0x46f   : > { %1869 = vrot.lane.b32.xlu1 %v1828_v26, %s2861_s14  ;;  %1859 = vrot.lane.b32.xlu0 %v1818_v27, %s2861_s14 }
 0x473   : > { %1884 = vrot.lane.b32.xlu1 %v1823_v21, %s2858_s21  ;;  %1874 = vrot.lane.b32.xlu0 %v1813_v22, %s2858_s21 }
 0x477   : > { %1889 = vrot.lane.b32.xlu1 %v1828_v26, %s2858_s21  ;;  %1879 = vrot.lane.b32.xlu0 %v1818_v27, %s2858_s21 }
 0x47b   : > { %948 = vperm.xlu1 %1711, %v1579_v30   ;;  %943 = vperm.xlu0 %1712, %v1578_v31  }
 0x47f   : > { %977 = vperm.xlu1 %1711, %v1583_v29   ;;  %972 = vperm.xlu0 %1712, %v1582_v32  }
 0x483   : > { %938 = vperm.xlu1 %1711, %v1577_v33   ;;  %933 = vperm.xlu0 %1712, %v1576_v34  }
 0x487   : > { %967 = vperm.xlu1 %1711, %v1581_v35   ;;  %962 = vperm.xlu0 %1712, %v1580_v36  }
 0x4cd   : > { %v1825_v63 = vpop.permute.xlu1 %1824  ;;  %v1815_v0 = vpop.permute.xlu0 %1814 }
 0x4ce   : > { %v1827_v13 = vunpack.i.h.bf16 %v1825_v63  ;;  %v1826_v37 = vunpack.i.l.bf16 %v1825_v63  ;;  %v1817_v38 = vunpack.i.h.bf16 %v1815_v0  ;;  %v1816_v2 = vunpack.i.l.bf16 %v1815_v0 }
 0x4d0   : > { %v814_v3 = vsel %vm305_vm6, %v1826_v37, %v1827_v13  ;;  %v813_v14 = vsel %vm305_vm6, %v1816_v2, %v1817_v38 }
 0x4d1   : > { %v850_v39 = vpack.c.bf16 %v814_v3, %v813_v14  ;;  %v1830_v40 = vpop.permute.xlu1 %1829  ;;  %v1820_v41 = vpop.permute.xlu0 %1819 }
 0x4d2   : > { %v1832_v42 = vunpack.i.h.bf16 %v1830_v40  ;;  %v1831_v43 = vunpack.i.l.bf16 %v1830_v40  ;;  %v1822_v44 = vunpack.i.h.bf16 %v1820_v41  ;;  %v1821_v45 = vunpack.i.l.bf16 %v1820_v41 }
 0x4d3   : > { %878 = vmatpush1.bf16.msra.mxu0 %v850_v39 }
 0x4d4   : > { %v812_v46 = vsel %vm305_vm6, %v1831_v43, %v1832_v42  ;;  %v811_v47 = vsel %vm305_vm6, %v1821_v45, %v1822_v44  ;;  %879 = vmatprep.subr.bf16.mxu0 %v2194_v5  ;;  %v2083_v44 = vld [vmem:[%s2840_s2 + $0x20] ss:$8 sps:$4 sm:$0xff]  }
 0x4d5   : > { %v849_v48 = vpack.c.bf16 %v812_v46, %v811_v47  ;;  %v1845_v49 = vpop.permute.xlu1 %1844  ;;  %v1835_v50 = vpop.permute.xlu0 %1834 }
 0x4d6   : > { %v1847_v51 = vunpack.i.h.bf16 %v1845_v49  ;;  %v1846_v52 = vunpack.i.l.bf16 %v1845_v49  ;;  %v1837_v53 = vunpack.i.h.bf16 %v1835_v50  ;;  %v1836_v54 = vunpack.i.l.bf16 %v1835_v50 }
 0x4d7   : > { %880 = vmatpush1.bf16.msra.mxu0 %v849_v48 }
 0x4d8   : > { %v790_v55 = vsel %vm298_vm5, %v1846_v52, %v1847_v51  ;;  %v789_v56 = vsel %vm298_vm5, %v1836_v54, %v1837_v53  ;;  %881 = vmatprep.subr.bf16.mxu0 %v2194_v5 }
 0x4d9   : > { %v848_v57 = vpack.c.bf16 %v790_v55, %v789_v56  ;;  %v1850_v58 = vpop.permute.xlu1 %1849  ;;  %v1840_v59 = vpop.permute.xlu0 %1839 }
 0x4da   : > { %v1852_v60 = vunpack.i.h.bf16 %v1850_v58  ;;  %v1851_v61 = vunpack.i.l.bf16 %v1850_v58  ;;  %v1842_v62 = vunpack.i.h.bf16 %v1840_v59  ;;  %v1841_v1 = vunpack.i.l.bf16 %v1840_v59 }
 0x4db   : > { %882 = vmatpush1.bf16.msra.mxu0 %v848_v57 }
 0x4dc   : > { %v788_v4 = vsel %vm298_vm5, %v1851_v61, %v1852_v60  ;;  %v787_v6 = vsel %vm298_vm5, %v1841_v1, %v1842_v62  ;;  %883 = vmatprep.subr.bf16.mxu0 %v2194_v5 }
 0x4dd   : > { %v847_v7 = vpack.c.bf16 %v788_v4, %v787_v6  ;;  %v1865_v8 = vpop.permute.xlu1 %1864  ;;  %v1855_v9 = vpop.permute.xlu0 %1854 }
 0x4de   : > { %v1867_v15 = vunpack.i.h.bf16 %v1865_v8  ;;  %v1866_v18 = vunpack.i.l.bf16 %v1865_v8  ;;  %v1857_v19 = vunpack.i.h.bf16 %v1855_v9  ;;  %v1856_v21 = vunpack.i.l.bf16 %v1855_v9 }
 0x4df   : > { %884 = vmatpush1.bf16.msra.mxu0 %v847_v7 }
 0x4e0   : > { %v766_v22 = vsel %vm291_vm4, %v1866_v18, %v1867_v15  ;;  %v765_v23 = vsel %vm291_vm4, %v1856_v21, %v1857_v19  ;;  %885 = vmatprep.subr.bf16.mxu0 %v2194_v5 }
 0x4e1   : > { %v846_v25 = vpack.c.bf16 %v766_v22, %v765_v23  ;;  %v1870_v26 = vpop.permute.xlu1 %1869  ;;  %v1860_v27 = vpop.permute.xlu0 %1859 }
 0x4e2   : > { %v1872_v28 = vunpack.i.h.bf16 %v1870_v26  ;;  %v1871_v30 = vunpack.i.l.bf16 %v1870_v26  ;;  %v1862_v31 = vunpack.i.h.bf16 %v1860_v27  ;;  %v1861_v29 = vunpack.i.l.bf16 %v1860_v27 }
 0x4e3   : > { %886 = vmatpush1.bf16.msra.mxu0 %v846_v25 }
 0x4e4   : > { %v764_v32 = vsel %vm291_vm4, %v1871_v30, %v1872_v28  ;;  %v763_v33 = vsel %vm291_vm4, %v1861_v29, %v1862_v31  ;;  %887 = vmatprep.subr.bf16.mxu0 %v2194_v5 }
 0x4e5   : > { %v845_v34 = vpack.c.bf16 %v764_v32, %v763_v33  ;;  %v1885_v35 = vpop.permute.xlu1 %1884  ;;  %v1875_v36 = vpop.permute.xlu0 %1874 }
 0x4e6   : > { %v1887_v63 = vunpack.i.h.bf16 %v1885_v35  ;;  %v1886_v0 = vunpack.i.l.bf16 %v1885_v35  ;;  %v1877_v13 = vunpack.i.h.bf16 %v1875_v36  ;;  %v1876_v37 = vunpack.i.l.bf16 %v1875_v36 }
 0x4e7   : > { %888 = vmatpush1.bf16.msra.mxu0 %v845_v34 }
 0x4e8   : > { %889 = vmatprep.subr.bf16.mxu0 %v2194_v5  ;;  %v838_v3 = vsel %vm312_vm2, %v1886_v0, %v1887_v63  ;;  %v837_v14 = vsel %vm312_vm2, %v1876_v37, %v1877_v13  ;;  %v2089_v37 = vld [vmem:[%s2840_s2 + $0x44] ss:$8 sps:$4 sm:$0xff]  }
 0x4e9   : > { %v1890_v38 = vpop.permute.xlu1 %1889  ;;  %v1880_v2 = vpop.permute.xlu0 %1879  ;;  %v852_v16 = vpack.c.bf16 %v838_v3, %v837_v14  ;;  %1602 = vmatprep.mubr.msk.bf16.mxu1 %vm600_vm10, %v2089_v37  ;;  %v1611_v3 = vld [vmem:[%s2843_s5 + $0x78] sm:$0xff]  ;;  %v1610_v14 = vld [vmem:[%s2843_s5 + $0x70] sm:$0xff] }
 0x4ea   : > { %v1892_v39 = vunpack.i.h.bf16 %v1890_v38  ;;  %v1891_v40 = vunpack.i.l.bf16 %v1890_v38  ;;  %v1882_v41 = vunpack.i.h.bf16 %v1880_v2  ;;  %v1881_v42 = vunpack.i.l.bf16 %v1880_v2  ;;  %v1607_v38 = vld [vmem:[%s2842_s4 + $0x78] sm:$0xff]  ;;  %v1606_v2 = vld [vmem:[%s2842_s4 + $0x70] sm:$0xff] }
 0x4eb   : > { %1568 = vmatpush1.bf16.msk.msra.mxu0 %vm2438_vm11, %v1567_v20 }
 0x4ec   : > { %891 = vmatprep.subr.bf16.mxu0 %v2194_v5  ;;  %v836_v17 = vsel %vm312_vm2, %v1891_v40, %v1892_v39  ;;  %v835_v20 = vsel %vm312_vm2, %v1881_v42, %v1882_v41  ;;  %v1605_v39 = vld [vmem:[%s2842_s4 + $0x68] sm:$0xff]  ;;  %v1604_v40 = vld [vmem:[%s2842_s4 + $0x60] sm:$0xff] }
 0x4ed   : > { %v851_v43 = vpack.c.bf16 %v836_v17, %v835_v20  ;;  %v1609_v41 = vld [vmem:[%s2843_s5 + $0x68] sm:$0xff]  ;;  %v1608_v42 = vld [vmem:[%s2843_s5 + $0x60] sm:$0xff] }
 0x4ef   : > { %1573 = vmatpush1.bf16.msk.msra.mxu0 %vm2438_vm11, %v1572_v12 }
 0x4f0   : > { %905 = vmatprep.subr.bf16.mxu0 %v2194_v5 }
 0x4f3   : > { %906 = vmatpush2.bf16.msra.mxu0 %v852_v16 }
 0x4f4   : > { %907 = vmatprep.subr.bf16.mxu0 %v2194_v5 }
 0x4f6   : > { %v944_v12 = vpop.permute.xlu0 %943  ;;  %v949_v45 = vpop.permute.xlu1 %948 }
 0x4f7   : > { %908 = vmatpush2.bf16.msra.mxu0 %v851_v43 }
 0x4f8   : > { %1404 = vmatprep.subr.bf16.mxu0 %v2194_v5 }
 0x4fa   : > { %910 = vmatmul.mubr.bf16.vlgmr.msra.gmra.mxu0 %v2083_v44  ;;  %v973_v46 = vpop.permute.xlu0 %972  ;;  %v978_v47 = vpop.permute.xlu1 %977 }
 0x4fb   : > { %1575 = vmatprep.mubr.msk.bf16.mxu0 %vm600_vm10, %v2084_v10 }
 0x4fe   : > { %v934_v48 = vpop.permute.xlu0 %933  ;;  %v939_v49 = vpop.permute.xlu1 %938 }
 0x502   : > { %918 = vmatmul.mubr.bf16.gmra.mxu0 %v2086_v11  ;;  %v963_v53 = vpop.permute.xlu0 %962  ;;  %v968_v57 = vpop.permute.xlu1 %967 }
 0x5ba   : > { %v911_v50 = vpop.f32.mrf.mxu0 }
 0x5bb   : > { %v951_v51 = vmul.f32 %v934_v48, %v911_v50 }
 0x5bc   : > { %v913_v52 = vpop.f32.mrf.mxu0 }
 0x5bd   : > { %v980_v54 = vadd.f32 %v963_v53, %v951_v51 }
 0x5be   : > { %v914_v55 = vpop.f32.mrf.mxu0 }
 0x5bf   : > { %v952_v56 = vmul.f32 %v939_v49, %v914_v55  ;;  %2111 = vtanh.f32 %v980_v54 }
 0x5c0   : > { %v916_v58 = vpop.f32.mrf.mxu0 }
 0x5c1   : > { %v981_v59 = vadd.f32 %v968_v57, %v952_v56 }
 0x5c2   : > { %v919_v60 = vpop.f32.mrf.mxu0 }
 0x5c3   : > { %2113 = vtanh.f32 %v981_v59  ;;  %v953_v61 = vmul.f32 %v944_v12, %v919_v60 }
 0x5c4   : > { %v921_v62 = vpop.f32.mrf.mxu0 }
 0x5c5   : > { %v982_v1 = vadd.f32 %v973_v46, %v953_v61 }
 0x5c6   : > { %v922_v4 = vpop.f32.mrf.mxu0 }
 0x5c7   : > { %v954_v6 = vmul.f32 %v949_v45, %v922_v4  ;;  %2115 = vtanh.f32 %v982_v1 }
 0x5c8   : > { %v924_v7 = vpop.f32.mrf.mxu0 }
 0x5c9   : > { %v983_v8 = vadd.f32 %v978_v47, %v954_v6 }
 0x5cb   : > { %2117 = vtanh.f32 %v983_v8 }
 0x5cc   : > { %v2112_v9 = vpop.eup %2111 }
 0x5d0   : > { %v2114_v15 = vpop.eup %2113 }
 0x5d1   : > { %v1898_v18 = vpack.i.bf16 %v2114_v15, %v2112_v9 }
 0x5d3   : > { %1899 = vrot.lane.b32.xlu1 %v1898_v18, %s2189_s18 }
 0x5d4   : > { %v2116_v19 = vpop.eup %2115 }
 0x5d8   : > { %v2118_v21 = vpop.eup %2117 }
 0x5d9   : > { %v1893_v22 = vpack.i.bf16 %v2118_v21, %v2116_v19 }
 0x5db   : > { %1894 = vrot.lane.b32.xlu0 %v1893_v22, %s2189_s18 }
 0x645   : > { %v1900_v23 = vpop.permute.xlu1 %1899 }
 0x646   : > { %v2589_v25 = vunpack.i.h.bf16 %v1900_v23  ;;  %v2591_v26 = vunpack.i.l.bf16 %v1900_v23 }
 0x648   : > { %v1600_v27 = vpack.c.bf16 %v2589_v25, %v2591_v26  ;;  %v1010_v36 = vsel %vm284_vm0, 0.0, %v2589_v25  ;;  %v1009_v63 = vsel %vm284_vm0, 0.0, %v2591_v26 }
 0x649   : > { %v1918_v0 = vpack.i.bf16 %v2589_v25, %v1010_v36  ;;  %v1908_v13 = vpack.i.bf16 %v2591_v26, %v1009_v63  ;;  %v2090_v25 = vld [vmem:[%s2840_s2 + $0x54] ss:$8 sps:$4 sm:$0xff]   ;;  %v2092_v26 = vld [vmem:[%s2840_s2 + $0x50] ss:$8 sps:$4 sm:$0xff]  }
 0x64d   : > { %v1895_v28 = vpop.permute.xlu0 %1894 }
 0x64e   : > { %v2595_v30 = vunpack.i.h.bf16 %v1895_v28  ;;  %v2597_v31 = vunpack.i.l.bf16 %v1895_v28 }
 0x650   : > { %v1012_v29 = vsel %vm284_vm0, 0.0, %v2595_v30  ;;  %v1011_v32 = vsel %vm284_vm0, 0.0, %v2597_v31  ;;  %v1595_v33 = vpack.c.bf16 %v2595_v30, %v2597_v31 }
 0x651   : > { %v1913_v34 = vpack.i.bf16 %v2595_v30, %v1012_v29  ;;  %v1903_v35 = vpack.i.bf16 %v2597_v31, %v1011_v32 }
 0x653   : > { %1914 = vrot.lane.b32.xlu1 %v1913_v34, %s2852_s23  ;;  %1904 = vrot.lane.b32.xlu0 %v1903_v35, %s2852_s23 }
 0x657   : > { %1919 = vrot.lane.b32.xlu1 %v1918_v0, %s2852_s23  ;;  %1909 = vrot.lane.b32.xlu0 %v1908_v13, %s2852_s23 }
 0x65b   : > { %1934 = vrot.lane.b32.xlu1 %v1913_v34, %s2862_s17  ;;  %1924 = vrot.lane.b32.xlu0 %v1903_v35, %s2862_s17 }
 0x65f   : > { %1939 = vrot.lane.b32.xlu1 %v1918_v0, %s2862_s17  ;;  %1929 = vrot.lane.b32.xlu0 %v1908_v13, %s2862_s17 }
 0x663   : > { %1954 = vrot.lane.b32.xlu1 %v1913_v34, %s2861_s14  ;;  %1944 = vrot.lane.b32.xlu0 %v1903_v35, %s2861_s14 }
 0x667   : > { %1959 = vrot.lane.b32.xlu1 %v1918_v0, %s2861_s14  ;;  %1949 = vrot.lane.b32.xlu0 %v1908_v13, %s2861_s14 }
 0x66b   : > { %1974 = vrot.lane.b32.xlu1 %v1913_v34, %s2858_s21  ;;  %1964 = vrot.lane.b32.xlu0 %v1903_v35, %s2858_s21 }
 0x66f   : > { %1979 = vrot.lane.b32.xlu1 %v1918_v0, %s2858_s21  ;;  %1969 = vrot.lane.b32.xlu0 %v1908_v13, %s2858_s21 }
 0x673   : > { %1218 = vperm.xlu1 %1711, %v1607_v38   ;;  %1213 = vperm.xlu0 %1712, %v1606_v2  }
 0x677   : > { %1247 = vperm.xlu1 %1711, %v1611_v3   ;;  %1242 = vperm.xlu0 %1712, %v1610_v14  }
 0x67b   : > { %1208 = vperm.xlu1 %1711, %v1605_v39   ;;  %1203 = vperm.xlu0 %1712, %v1604_v40  }
 0x67f   : > { %1237 = vperm.xlu1 %1711, %v1609_v41   ;;  %1232 = vperm.xlu0 %1712, %v1608_v42  }
 0x6c5   : > { %v1915_v16 = vpop.permute.xlu1 %1914  ;;  %v1905_v17 = vpop.permute.xlu0 %1904 }
 0x6c6   : > { %v1917_v20 = vunpack.i.h.bf16 %v1915_v16  ;;  %v1916_v43 = vunpack.i.l.bf16 %v1915_v16  ;;  %v1907_v44 = vunpack.i.h.bf16 %v1905_v17  ;;  %v1906_v10 = vunpack.i.l.bf16 %v1905_v17 }
 0x6c8   : > { %v1084_v11 = vsel %vm305_vm6, %v1916_v43, %v1917_v20  ;;  %v1083_v12 = vsel %vm305_vm6, %v1906_v10, %v1907_v44 }
 0x6c9   : > { %v1120_v45 = vpack.c.bf16 %v1084_v11, %v1083_v12  ;;  %v1920_v46 = vpop.permute.xlu1 %1919  ;;  %v1910_v47 = vpop.permute.xlu0 %1909 }
 0x6ca   : > { %v1922_v48 = vunpack.i.h.bf16 %v1920_v46  ;;  %v1921_v49 = vunpack.i.l.bf16 %v1920_v46  ;;  %v1912_v50 = vunpack.i.h.bf16 %v1910_v47  ;;  %v1911_v51 = vunpack.i.l.bf16 %v1910_v47 }
 0x6cb   : > { %1148 = vmatpush1.bf16.msra.mxu1 %v1120_v45 }
 0x6cc   : > { %v1082_v52 = vsel %vm305_vm6, %v1921_v49, %v1922_v48  ;;  %v1081_v53 = vsel %vm305_vm6, %v1911_v51, %v1912_v50  ;;  %1149 = vmatprep.subr.bf16.mxu1 %v2194_v5  ;;  %v2087_v50 = vld [vmem:[%s2840_s2 + $0x40] ss:$8 sps:$4 sm:$0xff]  }
 0x6cd   : > { %v1119_v54 = vpack.c.bf16 %v1082_v52, %v1081_v53  ;;  %v1935_v55 = vpop.permute.xlu1 %1934  ;;  %v1925_v56 = vpop.permute.xlu0 %1924 }
 0x6ce   : > { %v1937_v57 = vunpack.i.h.bf16 %v1935_v55  ;;  %v1936_v58 = vunpack.i.l.bf16 %v1935_v55  ;;  %v1927_v59 = vunpack.i.h.bf16 %v1925_v56  ;;  %v1926_v60 = vunpack.i.l.bf16 %v1925_v56 }
 0x6cf   : > { %1150 = vmatpush1.bf16.msra.mxu1 %v1119_v54 }
 0x6d0   : > { %v1060_v61 = vsel %vm298_vm5, %v1936_v58, %v1937_v57  ;;  %v1059_v62 = vsel %vm298_vm5, %v1926_v60, %v1927_v59  ;;  %1151 = vmatprep.subr.bf16.mxu1 %v2194_v5 }
 0x6d1   : > { %v1118_v1 = vpack.c.bf16 %v1060_v61, %v1059_v62  ;;  %v1940_v4 = vpop.permute.xlu1 %1939  ;;  %v1930_v6 = vpop.permute.xlu0 %1929 }
 0x6d2   : > { %v1942_v7 = vunpack.i.h.bf16 %v1940_v4  ;;  %v1941_v8 = vunpack.i.l.bf16 %v1940_v4  ;;  %v1932_v9 = vunpack.i.h.bf16 %v1930_v6  ;;  %v1931_v15 = vunpack.i.l.bf16 %v1930_v6 }
 0x6d3   : > { %1152 = vmatpush1.bf16.msra.mxu1 %v1118_v1 }
 0x6d4   : > { %v1058_v18 = vsel %vm298_vm5, %v1941_v8, %v1942_v7  ;;  %v1057_v19 = vsel %vm298_vm5, %v1931_v15, %v1932_v9  ;;  %1153 = vmatprep.subr.bf16.mxu1 %v2194_v5 }
 0x6d5   : > { %v1117_v21 = vpack.c.bf16 %v1058_v18, %v1057_v19  ;;  %v1955_v22 = vpop.permute.xlu1 %1954  ;;  %v1945_v23 = vpop.permute.xlu0 %1944 }
 0x6d6   : > { %v1957_v28 = vunpack.i.h.bf16 %v1955_v22  ;;  %v1956_v29 = vunpack.i.l.bf16 %v1955_v22  ;;  %v1947_v32 = vunpack.i.h.bf16 %v1945_v23  ;;  %v1946_v34 = vunpack.i.l.bf16 %v1945_v23 }
 0x6d7   : > { %1154 = vmatpush1.bf16.msra.mxu1 %v1117_v21 }
 0x6d8   : > { %v1036_v35 = vsel %vm291_vm4, %v1956_v29, %v1957_v28  ;;  %v1035_v36 = vsel %vm291_vm4, %v1946_v34, %v1947_v32  ;;  %1155 = vmatprep.subr.bf16.mxu1 %v2194_v5 }
 0x6d9   : > { %v1116_v63 = vpack.c.bf16 %v1036_v35, %v1035_v36  ;;  %v1960_v0 = vpop.permute.xlu1 %1959  ;;  %v1950_v13 = vpop.permute.xlu0 %1949 }
 0x6da   : > { %v1962_v37 = vunpack.i.h.bf16 %v1960_v0  ;;  %v1961_v38 = vunpack.i.l.bf16 %v1960_v0  ;;  %v1952_v2 = vunpack.i.h.bf16 %v1950_v13  ;;  %v1951_v3 = vunpack.i.l.bf16 %v1950_v13 }
 0x6db   : > { %1156 = vmatpush1.bf16.msra.mxu1 %v1116_v63 }
 0x6dc   : > { %v1034_v14 = vsel %vm291_vm4, %v1961_v38, %v1962_v37  ;;  %v1033_v39 = vsel %vm291_vm4, %v1951_v3, %v1952_v2  ;;  %1157 = vmatprep.subr.bf16.mxu1 %v2194_v5 }
 0x6dd   : > { %v1115_v40 = vpack.c.bf16 %v1034_v14, %v1033_v39  ;;  %v1975_v41 = vpop.permute.xlu1 %1974  ;;  %v1965_v42 = vpop.permute.xlu0 %1964 }
 0x6de   : > { %v1977_v16 = vunpack.i.h.bf16 %v1975_v41  ;;  %v1976_v17 = vunpack.i.l.bf16 %v1975_v41  ;;  %v1967_v20 = vunpack.i.h.bf16 %v1965_v42  ;;  %v1966_v43 = vunpack.i.l.bf16 %v1965_v42 }
 0x6df   : > { %1158 = vmatpush1.bf16.msra.mxu1 %v1115_v40 }
 0x6e0   : > { %1159 = vmatprep.subr.bf16.mxu1 %v2194_v5  ;;  %v1108_v11 = vsel %vm312_vm2, %v1976_v17, %v1977_v16  ;;  %v1107_v12 = vsel %vm312_vm2, %v1966_v43, %v1967_v20  ;;  %v2747_v43 = vld [vmem:[%s2841_s3] sm:$0xff] }
 0x6e1   : > { %v1980_v44 = vpop.permute.xlu1 %1979  ;;  %v1970_v10 = vpop.permute.xlu0 %1969  ;;  %v1122_v30 = vpack.c.bf16 %v1108_v11, %v1107_v12 }
 0x6e2   : > { %v1982_v45 = vunpack.i.h.bf16 %v1980_v44  ;;  %v1981_v46 = vunpack.i.l.bf16 %v1980_v44  ;;  %v1972_v47 = vunpack.i.h.bf16 %v1970_v10  ;;  %v1971_v48 = vunpack.i.l.bf16 %v1970_v10  ;;  %v1389_v44 = vld [vmem:[%s2844_s6] sm:$0xff] }
 0x6e3   : > { %1596 = vmatpush1.bf16.msk.msra.mxu1 %vm2438_vm11, %v1595_v33  ;;  %v1613_v10 = vcombine.high %v2747_v43, %v2747_v43 }
 0x6e4   : > { %1161 = vmatprep.subr.bf16.mxu1 %v2194_v5  ;;  %v1106_v31 = vsel %vm312_vm2, %v1981_v46, %v1982_v45  ;;  %v1105_v33 = vsel %vm312_vm2, %v1971_v48, %v1972_v47 }
 0x6e5   : > { %v1121_v49 = vpack.c.bf16 %v1106_v31, %v1105_v33  ;;  %1624 = vmatprep.mubr.msk.bf16.mxu0 %vm600_vm10, %v1613_v10 }
 0x6e7   : > { %1601 = vmatpush1.bf16.msk.msra.mxu1 %vm2438_vm11, %v1600_v27 }
 0x6e8   : > { %1175 = vmatprep.subr.bf16.mxu1 %v2194_v5 }
 0x6eb   : > { %1176 = vmatpush2.bf16.msra.mxu1 %v1122_v30 }
 0x6ec   : > { %1177 = vmatprep.subr.bf16.mxu1 %v2194_v5 }
 0x6ee   : > { %v1214_v27 = vpop.permute.xlu0 %1213  ;;  %v1219_v51 = vpop.permute.xlu1 %1218 }
 0x6ef   : > { %1178 = vmatpush2.bf16.msra.mxu1 %v1121_v49 }
 0x6f2   : > { %1180 = vmatmul.mubr.bf16.vlgmr.msra.gmra.mxu1 %v2087_v50  ;;  %v1243_v52 = vpop.permute.xlu0 %1242  ;;  %v1248_v53 = vpop.permute.xlu1 %1247 }
 0x6f3   : > { %1603 = vmatprep.mubr.msk.bf16.mxu1 %vm600_vm10, %v2090_v25 }
 0x6f6   : > { %v1204_v54 = vpop.permute.xlu0 %1203  ;;  %v1209_v55 = vpop.permute.xlu1 %1208 }
 0x6fa   : > { %1188 = vmatmul.mubr.bf16.gmra.mxu1 %v2092_v26  ;;  %v1233_v59 = vpop.permute.xlu0 %1232  ;;  %v1238_v1 = vpop.permute.xlu1 %1237 }
 0x7b2   : > { %v1181_v56 = vpop.f32.mrf.mxu1 }
 0x7b3   : > { %v1221_v57 = vmul.f32 %v1204_v54, %v1181_v56 }
 0x7b4   : > { %v1183_v58 = vpop.f32.mrf.mxu1 }
 0x7b5   : > { %v1250_v60 = vadd.f32 %v1233_v59, %v1221_v57 }
 0x7b6   : > { %v1184_v61 = vpop.f32.mrf.mxu1 }
 0x7b7   : > { %v1222_v62 = vmul.f32 %v1209_v55, %v1184_v61  ;;  %2119 = vtanh.f32 %v1250_v60 }
 0x7b8   : > { %v1186_v4 = vpop.f32.mrf.mxu1 }
 0x7b9   : > { %v1251_v6 = vadd.f32 %v1238_v1, %v1222_v62 }
 0x7ba   : > { %v1189_v7 = vpop.f32.mrf.mxu1 }
 0x7bb   : > { %2121 = vtanh.f32 %v1251_v6  ;;  %v1223_v8 = vmul.f32 %v1214_v27, %v1189_v7 }
 0x7bc   : > { %v1191_v9 = vpop.f32.mrf.mxu1 }
 0x7bd   : > { %v1252_v15 = vadd.f32 %v1243_v52, %v1223_v8 }
 0x7be   : > { %v1192_v18 = vpop.f32.mrf.mxu1 }
 0x7bf   : > { %v1224_v19 = vmul.f32 %v1219_v51, %v1192_v18  ;;  %2123 = vtanh.f32 %v1252_v15 }
 0x7c0   : > { %v1194_v21 = vpop.f32.mrf.mxu1 }
 0x7c1   : > { %v1253_v22 = vadd.f32 %v1248_v53, %v1224_v19 }
 0x7c3   : > { %2125 = vtanh.f32 %v1253_v22 }
 0x7c4   : > { %v2120_v23 = vpop.eup %2119 }
 0x7c8   : > { %v2122_v28 = vpop.eup %2121 }
 0x7c9   : > { %v1988_v29 = vpack.i.bf16 %v2122_v28, %v2120_v23 }
 0x7cb   : > { %1989 = vrot.lane.b32.xlu1 %v1988_v29, %s2189_s18 }
 0x7cc   : > { %v2124_v32 = vpop.eup %2123 }
 0x7d0   : > { %v2126_v34 = vpop.eup %2125 }
 0x7d1   : > { %v1983_v35 = vpack.i.bf16 %v2126_v34, %v2124_v32 }
 0x7d3   : > { %1984 = vrot.lane.b32.xlu0 %v1983_v35, %s2189_s18  ;;  %s2863_s18 = smov 125  }
 0x83d   : > { %v1990_v36 = vpop.permute.xlu1 %1989 }
 0x83e   : > { %v2704_v63 = vunpack.i.h.bf16 %v1990_v36  ;;  %v2706_v0 = vunpack.i.l.bf16 %v1990_v36 }
 0x840   : > { %v1622_v13 = vpack.c.bf16 %v2704_v63, %v2706_v0  ;;  %v1276_v42 = vsel %vm284_vm0, 0.0, %v2704_v63  ;;  %v1275_v16 = vsel %vm284_vm0, 0.0, %v2706_v0 }
 0x841   : > { %v2008_v17 = vpack.i.bf16 %v2704_v63, %v1276_v42  ;;  %v1998_v20 = vpack.i.bf16 %v2706_v0, %v1275_v16 }
 0x845   : > { %v1985_v37 = vpop.permute.xlu0 %1984 }
 0x846   : > { %v2710_v38 = vunpack.i.h.bf16 %v1985_v37  ;;  %v2712_v2 = vunpack.i.l.bf16 %v1985_v37 }
 0x848   : > { %v1278_v3 = vsel %vm284_vm0, 0.0, %v2710_v38  ;;  %v1277_v14 = vsel %vm284_vm0, 0.0, %v2712_v2  ;;  %v1617_v39 = vpack.c.bf16 %v2710_v38, %v2712_v2 }
 0x849   : > { %v2003_v40 = vpack.i.bf16 %v2710_v38, %v1278_v3  ;;  %v1993_v41 = vpack.i.bf16 %v2712_v2, %v1277_v14 }
 0x84b   : > { %2004 = vrot.lane.b32.xlu1 %v2003_v40, %s2863_s18  ;;  %1994 = vrot.lane.b32.xlu0 %v1993_v41, %s2863_s18 }
 0x84f   : > { %2009 = vrot.lane.b32.xlu1 %v2008_v17, %s2863_s18  ;;  %1999 = vrot.lane.b32.xlu0 %v1998_v20, %s2863_s18  ;;  %s2196_s18 = smov [#allocation2]  }
 0x850   : > { %s2131_s13 = sshll.u32 %s2196_s18, 4  ;;  %s2132_s13 = int_to_ptr.vmem [resolvable:$false] %s2131_s13 }
 0x851   : > { %s2133_s15 = scalar_lea.vmem %s2132_s13, 256 }
 0x853   : > { %2024 = vrot.lane.b32.xlu1 %v2003_v40, %s2862_s17  ;;  %2014 = vrot.lane.b32.xlu0 %v1993_v41, %s2862_s17 }
 0x857   : > { %2029 = vrot.lane.b32.xlu1 %v2008_v17, %s2862_s17  ;;  %2019 = vrot.lane.b32.xlu0 %v1998_v20, %s2862_s17 }
 0x85b   : > { %2044 = vrot.lane.b32.xlu1 %v2003_v40, %s2861_s14  ;;  %2034 = vrot.lane.b32.xlu0 %v1993_v41, %s2861_s14 }
 0x85f   : > { %2049 = vrot.lane.b32.xlu1 %v2008_v17, %s2861_s14  ;;  %2039 = vrot.lane.b32.xlu0 %v1998_v20, %s2861_s14 }
 0x863   : > { %2064 = vrot.lane.b32.xlu1 %v2003_v40, %s2858_s21  ;;  %2054 = vrot.lane.b32.xlu0 %v1993_v41, %s2858_s21 }
 0x867   : > { %2069 = vrot.lane.b32.xlu1 %v2008_v17, %s2858_s21  ;;  %2059 = vrot.lane.b32.xlu0 %v1998_v20, %s2858_s21  ;;  %s267_s21 = sand.u32 1, %s2179_s25  }
 0x868   : > { %s1522_s14 = sshll.u32 %s267_s21, 3  ;;  %s1446_s19 = scalar_lea.sflag [#allocation3], %s267_s21 }
 0x869   : > { %s269_s23 = scalar_lea.vmem [#allocation2], %s1522_s14 }
 0x86a   : > { %s1459_s29 = sshll.u32 %s269_s23, 4  ;;  %s2799_s29 = int_to_ptr.vmem [resolvable:$true] %s1459_s29 }
 0x86b   : > { %1392 = vperm.xlu0 %1712, %v1389_v44   ;;  %s2127_s28 = scalar_lea.vmem %s2799_s29, 128  ;;  %p2134_p0 = scmp.lt.s32.totalorder %s2799_s29, %s2132_s13 }
 0x86c   : > { %p2128_p11 = scmp.ne.s32.totalorder %s2799_s29, %s2127_s28  ;;  %p2135_p1 = scmp.lt.s32.totalorder %s2133_s15, %s2127_s28 }
 0x86e   : > { %p2129_p12 = pnand %p2128_p11, %p2275_p5  ;;  %p2136_p2 = por %p2135_p1, %p2134_p0 }
 0x870   : > { %p2130_p13 = pneg %p2129_p12 }
 0x872   : > { %p2137_p3 = pnand %p2136_p2, %p2130_p13 }
 0x8bd   : > { %v2005_v11 = vpop.permute.xlu1 %2004  ;;  %v1995_v12 = vpop.permute.xlu0 %1994 }
 0x8be   : > { %v2007_v45 = vunpack.i.h.bf16 %v2005_v11  ;;  %v2006_v46 = vunpack.i.l.bf16 %v2005_v11  ;;  %v1997_v47 = vunpack.i.h.bf16 %v1995_v12  ;;  %v1996_v48 = vunpack.i.l.bf16 %v1995_v12 }
 0x8c0   : > { %v1350_v30 = vsel %vm305_vm6, %v2006_v46, %v2007_v45  ;;  %v1349_v31 = vsel %vm305_vm6, %v1996_v48, %v1997_v47 }
 0x8c1   : > { %v1386_v33 = vpack.c.bf16 %v1350_v30, %v1349_v31  ;;  %v2010_v49 = vpop.permute.xlu1 %2009  ;;  %v2000_v50 = vpop.permute.xlu0 %1999 }
 0x8c2   : > { %v2012_v25 = vunpack.i.h.bf16 %v2010_v49  ;;  %v2011_v26 = vunpack.i.l.bf16 %v2010_v49  ;;  %v2002_v27 = vunpack.i.h.bf16 %v2000_v50  ;;  %v2001_v51 = vunpack.i.l.bf16 %v2000_v50 }
 0x8c3   : > { %1405 = vmatpush1.bf16.msra.mxu0 %v1386_v33 }
 0x8c4   : > { %v1348_v52 = vsel %vm305_vm6, %v2011_v26, %v2012_v25  ;;  %v1347_v53 = vsel %vm305_vm6, %v2001_v51, %v2002_v27  ;;  %1406 = vmatprep.subr.bf16.mxu0 %v2194_v5  ;;  %v1612_v51 = vcombine.low %v2747_v43, %v2747_v43 }
 0x8c5   : > { %v1385_v54 = vpack.c.bf16 %v1348_v52, %v1347_v53  ;;  %v2025_v55 = vpop.permute.xlu1 %2024  ;;  %v2015_v56 = vpop.permute.xlu0 %2014 }
 0x8c6   : > { %v2027_v57 = vunpack.i.h.bf16 %v2025_v55  ;;  %v2026_v58 = vunpack.i.l.bf16 %v2025_v55  ;;  %v2017_v59 = vunpack.i.h.bf16 %v2015_v56  ;;  %v2016_v60 = vunpack.i.l.bf16 %v2015_v56 }
 0x8c7   : > { %1407 = vmatpush1.bf16.msra.mxu0 %v1385_v54 }
 0x8c8   : > { %v1326_v61 = vsel %vm298_vm5, %v2026_v58, %v2027_v57  ;;  %v1325_v62 = vsel %vm298_vm5, %v2016_v60, %v2017_v59  ;;  %1408 = vmatprep.subr.bf16.mxu0 %v2194_v5 }
 0x8c9   : > { %v1384_v1 = vpack.c.bf16 %v1326_v61, %v1325_v62  ;;  %v2030_v4 = vpop.permute.xlu1 %2029  ;;  %v2020_v6 = vpop.permute.xlu0 %2019 }
 0x8ca   : > { %v2032_v7 = vunpack.i.h.bf16 %v2030_v4  ;;  %v2031_v8 = vunpack.i.l.bf16 %v2030_v4  ;;  %v2022_v9 = vunpack.i.h.bf16 %v2020_v6  ;;  %v2021_v15 = vunpack.i.l.bf16 %v2020_v6 }
 0x8cb   : > { %1409 = vmatpush1.bf16.msra.mxu0 %v1384_v1 }
 0x8cc   : > { %v1324_v18 = vsel %vm298_vm5, %v2031_v8, %v2032_v7  ;;  %v1323_v19 = vsel %vm298_vm5, %v2021_v15, %v2022_v9  ;;  %1410 = vmatprep.subr.bf16.mxu0 %v2194_v5 }
 0x8cd   : > { %v1383_v21 = vpack.c.bf16 %v1324_v18, %v1323_v19  ;;  %v2045_v22 = vpop.permute.xlu1 %2044  ;;  %v2035_v23 = vpop.permute.xlu0 %2034 }
 0x8ce   : > { %v2047_v28 = vunpack.i.h.bf16 %v2045_v22  ;;  %v2046_v29 = vunpack.i.l.bf16 %v2045_v22  ;;  %v2037_v32 = vunpack.i.h.bf16 %v2035_v23  ;;  %v2036_v34 = vunpack.i.l.bf16 %v2035_v23 }
 0x8cf   : > { %1411 = vmatpush1.bf16.msra.mxu0 %v1383_v21 }
 0x8d0   : > { %v1302_v35 = vsel %vm291_vm4, %v2046_v29, %v2047_v28  ;;  %v1301_v36 = vsel %vm291_vm4, %v2036_v34, %v2037_v32  ;;  %1412 = vmatprep.subr.bf16.mxu0 %v2194_v5 }
 0x8d1   : > { %v1382_v37 = vpack.c.bf16 %v1302_v35, %v1301_v36  ;;  %v2050_v3 = vpop.permute.xlu1 %2049  ;;  %v2040_v14 = vpop.permute.xlu0 %2039 }
 0x8d2   : > { %v2052_v40 = vunpack.i.h.bf16 %v2050_v3  ;;  %v2051_v41 = vunpack.i.l.bf16 %v2050_v3  ;;  %v2042_v42 = vunpack.i.h.bf16 %v2040_v14  ;;  %v2041_v16 = vunpack.i.l.bf16 %v2040_v14 }
 0x8d3   : > { %1413 = vmatpush1.bf16.msra.mxu0 %v1382_v37 }
 0x8d4   : > { %v1300_v17 = vsel %vm291_vm4, %v2051_v41, %v2052_v40  ;;  %v1299_v20 = vsel %vm291_vm4, %v2041_v16, %v2042_v42  ;;  %1414 = vmatprep.subr.bf16.mxu0 %v2194_v5 }
 0x8d5   : > { %v1381_v44 = vpack.c.bf16 %v1300_v17, %v1299_v20  ;;  %v2065_v10 = vpop.permute.xlu1 %2064  ;;  %v2055_v11 = vpop.permute.xlu0 %2054 }
 0x8d6   : > { %v2067_v12 = vunpack.i.h.bf16 %v2065_v10  ;;  %v2066_v45 = vunpack.i.l.bf16 %v2065_v10  ;;  %v2057_v46 = vunpack.i.h.bf16 %v2055_v11  ;;  %v2056_v47 = vunpack.i.l.bf16 %v2055_v11 }
 0x8d7   : > { %1415 = vmatpush1.bf16.msra.mxu0 %v1381_v44 }
 0x8d8   : > { %1416 = vmatprep.subr.bf16.mxu0 %v2194_v5  ;;  %v1374_v31 = vsel %vm312_vm2, %v2066_v45, %v2067_v12  ;;  %v1373_v33 = vsel %vm312_vm2, %v2056_v47, %v2057_v46 }
 0x8d9   : > { %v2070_v48 = vpop.permute.xlu1 %2069  ;;  %v2060_v30 = vpop.permute.xlu0 %2059  ;;  %v1388_v38 = vpack.c.bf16 %v1374_v31, %v1373_v33 }
 0x8da   : > { %v2072_v49 = vunpack.i.h.bf16 %v2070_v48  ;;  %v2071_v50 = vunpack.i.l.bf16 %v2070_v48  ;;  %v2062_v25 = vunpack.i.h.bf16 %v2060_v30  ;;  %v2061_v26 = vunpack.i.l.bf16 %v2060_v30 }
 0x8db   : > { %1618 = vmatpush1.bf16.msk.msra.mxu0 %vm2438_vm11, %v1617_v39 }
 0x8dc   : > { %1418 = vmatprep.subr.bf16.mxu0 %v2194_v5  ;;  %v1372_v2 = vsel %vm312_vm2, %v2071_v50, %v2072_v49  ;;  %v1371_v39 = vsel %vm312_vm2, %v2061_v26, %v2062_v25 }
 0x8dd   : > { %v1387_v27 = vpack.c.bf16 %v1372_v2, %v1371_v39 }
 0x8df   : > { %1623 = vmatpush1.bf16.msk.msra.mxu0 %vm2438_vm11, %v1622_v13 }
 0x8e0   : > { %1432 = vmatprep.subr.bf16.mxu0 %v2194_v5 }
 0x8e3   : > { %1433 = vmatpush2.bf16.msra.mxu0 %v1388_v38 }
 0x8e4   : > { %1434 = vmatprep.subr.bf16.mxu0 %v2194_v5 }
 0x8e6   : > { %v1393_v24 = vpop.permute.xlu0 %1392 }
 0x8e7   : > { %1435 = vmatpush2.bf16.msra.mxu0 %v1387_v27 }
 0x8ea   : > { %1437 = vmatmul.mubr.bf16.vlgmr.msra.gmra.mxu0 %v1612_v51 }
 0x9aa   : > { %v1438_v63 = vpop.f32.mrf.mxu0 }
 0x9ab   : > { %v1439_v0 = vadd.f32 %v1438_v63, %v1393_v24 }
 0x9ac   : > { %v1440_v5 = vpop.f32.mrf.mxu0 }
 0x9ad   : > { %1444 = vst [vmem:[%s269_s23] sm:$0xff] %v1439_v0 }
 0x9ae   : > { %v1441_v13 = vpop.f32.mrf.mxu0 }
 0x9af   : > { %2140 = shalt.err (!%p2137_p3)
}
 0x9b0   : > { %s2141_s17 = scalar_lea.hbm %s2797_s9, 128  ;;  %s2145_s14 = scalar_lea.hbm %s2845_s7, 256 }
 0x9b1   : > { %p2142_p4 = scmp.ne.s32.totalorder %s2797_s9, %s2141_s17  ;;  %p2146_p9 = scmp.lt.s32.totalorder %s2797_s9, %s2845_s7 }
 0x9b2   : > { %p2147_p10 = scmp.lt.s32.totalorder %s2145_s14, %s2141_s17 }
 0x9b3   : > { %p2143_p7 = pnand %p2142_p4, %p2275_p5 }
 0x9b4   : > { %p2148_p11 = por %p2147_p10, %p2146_p9 }
 0x9b5   : > { %p2144_p8 = pneg %p2143_p7 }
 0x9b7   : > { %p2149_p12 = pnand %p2148_p11, %p2144_p8 }
 0x9b9   : > { %2152 = shalt.err (!%p2149_p12)
}
 0x9ba   : > { %1645 = dma.vmem_to_hbm [thread:$0]  (%p2275_p5), %s2799_s29, 128, %s2797_s9, %s1446_s19   ;;  %v1442_v43 = vpop.f32.mrf.mxu0 }
 0x9bb PF: > { %p1651_p13 = scmp.ge.s32.totalorder %s2187_s27, 2  ;;  %s1471_s22 = sand.u32 1, %s2175_s24  }
 0x9bc   : > { %s1472_s8 = scalar_lea.sflag [#allocation3], %s1471_s22 }
 0x9bd   : > { %p1648_p0 = pnand %p1651_p13, %p2279_p6 }
 0x9bf   : > { %p1649_p1 = pneg %p1648_p0 }
 0x9c1   : > { %2170 = dma.done.wait (%p1649_p1), %s1472_s8, 128  }
 0x9c2   : > { %2172 = vsyncadd (%p1649_p1), %s1472_s8, 4294967168  ;;  %p17_p2 = scmp.ge.s32.totalorder %s2262_s30, 4   ;;  %s2864_s24 = smov %s2179_s25 }
 0x9c3   : > { %s2865_s25 = smov %s2183_s26  ;;  %s2866_s26 = smov %s2273_s10 }
 0x9c4   : > { %s2867_s27 = smov %s2262_s30  ;;  %19 = sbr.rel (!%p17_p2) target bundleno = 3 (0x3), region = 91 }
 0x9c9   :  { %1477 = vsyncpa [#allocation3], 1 }
 0x9ca   :  { %1479 = vsyncpa [#allocation3 + $0x1], 1 }

</bundles_post_ra>
